<compile_context>
chip_gen: v6e
topology: v6e:2x2x1
jax: 0.10.0
libtpu: 0.0.40
codegen_flags: <defaults>
</compile_context>

<pallas_src>
import math

import numpy as np

import jax
import jax.numpy as jnp
from jax.experimental import pallas as pl
from jax.experimental.pallas import tpu as pltpu

# ---- config (mirrors global_config / layer_config at small sizes) ----
MSG_EMBED = 32        # msg_embed_size
NUM_HEADS = 4         # num_of_head
D_K = MSG_EMBED // NUM_HEADS
FNN_SIZE = 64         # fnn_size
EPS = 1e-6

# MXU operand precision:
#   True  -> f32-faithful matmuls via the classic bf16x3 compensated product
#            (3 full-rate bf16 MXU passes, ~1e-6 rel error).  The PyTorch module
#            is f32, and the test then asserts a tight 2e-3 tolerance.
#   False -> single-pass bf16 operands (3x fewer MXU passes): the usual
#            production choice for transformer layers; outputs then differ from
#            the f32 reference by ~1e-2 after LayerNorm's 1/std amplification.
EXACT_F32_MATMUL = True


def _mxu_dot(a, b):
    """a @ b on the MXU with f32 accumulation (see EXACT_F32_MATMUL)."""
    dot = lambda x, y: jnp.dot(x, y, preferred_element_type=jnp.float32)
    a_hi = a.astype(jnp.bfloat16)
    b_hi = b.astype(jnp.bfloat16)
    if not EXACT_F32_MATMUL:
        return dot(a_hi, b_hi)
    a_lo = (a - a_hi.astype(jnp.float32)).astype(jnp.bfloat16)
    b_lo = (b - b_hi.astype(jnp.float32)).astype(jnp.bfloat16)
    return dot(a_hi, b_hi) + dot(a_lo, b_hi) + dot(a_hi, b_lo)


def _sum_lane_chunks(a, n_chunks):
    """Sum `n_chunks` equal-width chunks of the last axis -> width/n_chunks.
    The first halvings are vreg-aligned slices; all adds are exact f32 VPU ops."""
    while n_chunks > 1 and n_chunks % 2 == 0:
        half = a.shape[-1] // 2
        a = a[..., :half] + a[..., half:]
        n_chunks //= 2
    if n_chunks > 1:                       # non power-of-two fallback
        w = a.shape[-1] // n_chunks
        a = sum(a[..., i * w:(i + 1) * w] for i in range(n_chunks))
    return a


def _layernorm(y, w, b):
    # Matches the module's LayerNorm: torch.std is *unbiased* (N-1) and the
    # denominator is (std + eps), not sqrt(var + eps).  Exact division: LN's
    # 1/std amplifies errors, so no approximate reciprocal here.
    e = y.shape[-1]
    mean = jnp.mean(y, axis=-1, keepdims=True)
    diff = y - mean
    var = jnp.sum(diff * diff, axis=-1, keepdims=True) * (1.0 / (e - 1))
    return w * (diff / (jnp.sqrt(var) + EPS)) + b


def msg_encoder_kernel(x_ref, maskb_ref,
                       wqkv_ref, bqkv_ref, selcat_ref, bcat_ref,
                       wo_ref, bo_ref, ln1w_ref, ln1b_ref,
                       w1_ref, b1_ref, w2_ref, b2_ref,
                       ln2w_ref, ln2b_ref,
                       out_ref):
    T, M, E = x_ref.shape          # T slabs (batch*day), M msgs (=8 sublanes), E feats
    N = T * M
    SW = NUM_HEADS * M             # stacked score width: all heads side by side

    # (T, M, E) -> (N, E): merges leading dims onto the M(=8)-row sublane tile; free.
    x = x_ref[...].reshape(N, E)
    mask_b = maskb_ref[...]        # (T, 1, SW) additive bias (-1e9 where masked)

    # --- fused QKV projection; 1/sqrt(d_k) is pre-folded into the Q columns ---
    qkv = _mxu_dot(x, wqkv_ref[...]) + bqkv_ref[...]            # (N, 3E) f32
    q3 = qkv[:, :E].reshape(T, M, E)
    k3 = qkv[:, E:2 * E].reshape(T, M, E)
    v3 = qkv[:, 2 * E:].reshape(T, M, E)

    # --- scores for ALL heads & keys in one lane-dense tensor ---------------
    # Pcat[t, m, n*E + e] = q[t,m,e] * k[t,n,e]   (VPU, sublane-broadcast of k row n)
    pcat = jnp.concatenate([q3 * k3[:, n:n + 1, :] for n in range(M)], axis=-1)
    # one N-row MXU matmul sums each head's d_k lanes -> s[t, m, h*M + n]
    s = _mxu_dot(pcat.reshape(N, M * E), selcat_ref[...]).reshape(T, M, SW)
    s = s + mask_b                                   # one mask add for all heads
    # softmax is invariant to any per-row shift, so one max over all heads is exact
    s = s - jnp.max(s, axis=-1, keepdims=True)
    p = jnp.exp(s)                                   # (T, M, SW) unnormalized probs

    # --- context: broadcast probs to the head's d_k lanes, weight by V, sum keys
    # PB[t, m, n*E + e] = p[t, m, h(e)*M + n]      (one N-row MXU matmul)
    pb = _mxu_dot(p.reshape(N, SW), bcat_ref[...]).reshape(T, M, M * E)
    vcat = jnp.concatenate([v3[:, n:n + 1, :] for n in range(M)], axis=-1)   # (T,1,M*E)
    ctx_u = _sum_lane_chunks(pb * vcat, M)           # (T, M, E) unnormalized context
    den = _sum_lane_chunks(pb, M)                    # per-head softmax denom, already
    ctx = ctx_u / den                                #   broadcast across the head's lanes

    # ctx is already in the concat-head (h*d_k + d) layout -> one Wo matmul
    attn = _mxu_dot(ctx.reshape(N, E), wo_ref[...]) + bo_ref[...]

    # --- AddNorm 0 (dropout = identity in eval) ---
    x1 = x + _layernorm(attn, ln1w_ref[...], ln1b_ref[...])

    # --- FNN ---
    h1 = jnp.maximum(_mxu_dot(x1, w1_ref[...]) + b1_ref[...], 0.0)
    y = _mxu_dot(h1, w2_ref[...]) + b2_ref[...]

    # --- AddNorm 1 ---
    out = x1 + _layernorm(y, ln2w_ref[...], ln2b_ref[...])
    out_ref[...] = out.reshape(T, M, E).astype(out_ref.dtype)


def _pack_params(params, m):
    """Fuse Wq|Wk|Wv (with 1/sqrt(d_k) folded into Q), build the static 0/1
    selector matrices for the lane-dense score / prob-broadcast matmuls."""
    (wq, bq, wk, bk, wv, bv, wo, bo,
     ln1w, ln1b, w1, b1, w2, b2, ln2w, ln2b) = params
    e = wq.shape[0]
    dk = e // NUM_HEADS
    inv = 1.0 / math.sqrt(dk)
    wqkv = jnp.concatenate([wq * inv, wk, wv], axis=1)            # (E, 3E)
    bqkv = jnp.concatenate([bq * inv, bk, bv], axis=1)            # (1, 3E)

    wide = m * e                     # products width   (key-major chunks of E)
    sw = NUM_HEADS * m               # stacked score width (head-major chunks of M)
    j = np.arange(wide)              # j = n*E + e_
    col = (j % e) // dk * m + j // e       # -> h(e_)*M + n
    selcat = np.zeros((wide, sw), np.float32)
    selcat[j, col] = 1.0                   # sums each head's d_k product lanes
    bcat = np.ascontiguousarray(selcat.T)  # broadcasts prob of key n to d_k lanes

    return [wqkv, bqkv, jnp.asarray(selcat), jnp.asarray(bcat),
            wo, bo, ln1w, ln1b, w1, b1, w2, b2, ln2w, ln2b]


def _num_tensorcores():
    # v7x exposes 2 TensorCores per chip to a single Pallas grid (shared via
    # dimension_semantics=("parallel",)); v5e/v6e have 1.  Fall back to 1.
    try:
        return max(1, int(getattr(jax.devices()[0], "num_cores", 1)))
    except Exception:
        return 1


def _choose_grid(bd, cap=256):
    """Return (tile, n_steps).  A single step for small problems (per-step
    overhead + halved matmul rows would cost more than they save); otherwise an
    EVEN split across TensorCores with equal tiles so no core idles.  `cap`
    keeps the M*E-wide score/context temporaries (~tile*8KiB each) well under
    every generation's scoped-VMEM budget."""
    n_cores = _num_tensorcores()
    if bd <= cap and (n_cores == 1 or bd <= 64):
        return bd, 1
    n_steps = max(int(pl.cdiv(bd, cap)), n_cores)
    n_steps = int(pl.cdiv(n_steps, n_cores)) * n_cores     # equal share per core
    tile = int(pl.cdiv(bd, n_steps))
    return tile, n_steps


def msg_encoder_layer(msg_embed, mask, params, tile=None):
    """msg_embed: (B, D, M, E) f32; mask: (B, D, M) {0,1} (1 => masked); -> (B, D, M, E)."""
    B, D, M, E = msg_embed.shape
    H = NUM_HEADS
    BD = B * D
    x3 = msg_embed.reshape(BD, M, E)
    # additive mask bias, pre-tiled across heads: lane h*M + n  <-  mask[n] * -1e9
    mask_b = jnp.tile(mask.reshape(BD, 1, M).astype(jnp.float32) * (-1e9), (1, 1, H))

    if tile is None:
        tile, n_steps = _choose_grid(BD)
    else:
        n_steps = int(pl.cdiv(BD, tile))
    bd_pad = tile * n_steps
    if bd_pad != BD:
        x3 = jnp.pad(x3, ((0, bd_pad - BD), (0, 0), (0, 0)))
        mask_b = jnp.pad(mask_b, ((0, bd_pad - BD), (0, 0), (0, 0)))

    packed = _pack_params(params, M)

    def full_spec(p):
        nd = p.ndim
        return pl.BlockSpec(p.shape, lambda i, _nd=nd: (0,) * _nd)

    in_specs = [
        pl.BlockSpec((tile, M, E), lambda i: (i, 0, 0)),        # x slab
        pl.BlockSpec((tile, 1, H * M), lambda i: (i, 0, 0)),    # mask bias
    ] + [full_spec(p) for p in packed]

    F = FNN_SIZE
    sw, wide = H * M, M * E
    flops_slab = 2 * M * (E * 3 * E + wide * sw + sw * wide + E * E + E * F * 2)
    weight_bytes = sum(int(p.size) * p.dtype.itemsize for p in packed)
    cost = pl.CostEstimate(
        flops=flops_slab * bd_pad,
        transcendentals=bd_pad * M * sw,
        bytes_accessed=2 * bd_pad * M * E * 4 + bd_pad * sw * 4 + weight_bytes)

    out = pl.pallas_call(
        msg_encoder_kernel,
        out_shape=jax.ShapeDtypeStruct((bd_pad, M, E), msg_embed.dtype),
        grid=(n_steps,),
        in_specs=in_specs,
        out_specs=pl.BlockSpec((tile, M, E), lambda i: (i, 0, 0)),
        compiler_params=pltpu.CompilerParams(
            dimension_semantics=("parallel",),
            vmem_limit_bytes=32 * 1024 * 1024),
        cost_estimate=cost,
    )(x3, mask_b, *packed)
    return out[:BD].reshape(B, D, M, E)


def make_params(key):
    E, F = MSG_EMBED, FNN_SIZE
    ks = jax.random.split(key, 6)
    scale = 0.05
    wq = scale * jax.random.normal(ks[0], (E, E), jnp.float32)
    wk = scale * jax.random.normal(ks[1], (E, E), jnp.float32)
    wv = scale * jax.random.normal(ks[2], (E, E), jnp.float32)
    wo = scale * jax.random.normal(ks[3], (E, E), jnp.float32)
    bq = jnp.full((1, E), 0.01, jnp.float32)
    bk = jnp.full((1, E), -0.01, jnp.float32)
    bv = jnp.full((1, E), 0.02, jnp.float32)
    bo = jnp.full((1, E), 0.0, jnp.float32)
    ln1w = jnp.ones((1, E), jnp.float32)
    ln1b = jnp.zeros((1, E), jnp.float32)
    w1 = scale * jax.random.normal(ks[4], (E, F), jnp.float32)
    b1 = jnp.full((1, F), 0.01, jnp.float32)
    w2 = scale * jax.random.normal(ks[5], (F, E), jnp.float32)
    b2 = jnp.full((1, E), 0.0, jnp.float32)
    ln2w = jnp.ones((1, E), jnp.float32)
    ln2b = jnp.zeros((1, E), jnp.float32)
    return [wq, bq, wk, bk, wv, bv, wo, bo, ln1w, ln1b, w1, b1, w2, b2, ln2w, ln2b]


def reference(msg_embed, mask, params):
    """Pure-JAX f32 reference reproducing the PyTorch forward (eval mode)."""
    (wq, bq, wk, bk, wv, bv, wo, bo,
     ln1w, ln1b, w1, b1, w2, b2, ln2w, ln2b) = params
    B, D, M, E = msg_embed.shape
    with jax.default_matmul_precision("highest"):
        x = msg_embed.reshape(-1, M, E)
        m = mask.reshape(-1, 1, 1, M).astype(jnp.float32)

        def split_heads(t):
            return t.reshape(-1, M, NUM_HEADS, D_K).transpose(0, 2, 1, 3)

        q = split_heads(x @ wq + bq)
        k = split_heads(x @ wk + bk)
        v = split_heads(x @ wv + bv)
        scores = (q @ jnp.swapaxes(k, -2, -1)) / math.sqrt(D_K) + m * (-1e9)
        p = jax.nn.softmax(scores, axis=-1)
        ctx = (p @ v).transpose(0, 2, 1, 3).reshape(-1, M, E)
        attn_out = ctx @ wo + bo

        def ln(y, w, b):
            mean = y.mean(-1, keepdims=True)
            std = jnp.sqrt(jnp.sum((y - mean) ** 2, -1, keepdims=True) / (E - 1))
            return w * (y - mean) / (std + EPS) + b

        x1 = x + ln(attn_out, ln1w, ln1b)
        y = jnp.maximum(x1 @ w1 + b1, 0.0) @ w2 + b2
        out = x1 + ln(y, ln2w, ln2b)
    return out.reshape(B, D, M, E)


if __name__ == "__main__":
    B, D, M, E = 2, 2, 8, MSG_EMBED   # batch, max_n_days, max_n_msgs, msg_embed_size
    key = jax.random.PRNGKey(0)
    k_x, k_m, k_p = jax.random.split(key, 3)
    msg_embed = jax.random.normal(k_x, (B, D, M, E), jnp.float32)
    mask = (jax.random.uniform(k_m, (B, D, M)) < 0.25).astype(jnp.float32)
    params = make_params(k_p)

    out = jax.block_until_ready(msg_encoder_layer(msg_embed, mask, params))
    ref = reference(msg_embed, mask, params)
    assert out.shape == (B, D, M, E)

    # With EXACT_F32_MATMUL the only deviations are bf16x3 residuals and a few
    # ULP of exp/sqrt (<~1e-4 after LayerNorm amplification).  In fast bf16 mode
    # the well-understood operand-rounding error reaches ~1e-2..4e-2 at the
    # worst element after LayerNorm's 1/std amplification.
    tol = 2e-3 if EXACT_F32_MATMUL else 6e-2
    max_err = jnp.max(jnp.abs(out - ref))
    assert jnp.allclose(out, ref, atol=tol, rtol=tol), f"max abs err {max_err}"
    print("KERNEL_OK")
</pallas_src>

<mosaic_0001>
module attributes {stable_mosaic.version = 11 : i64} {
  func.func @msg_encoder_kernel(%arg0: i32, %arg1: memref<4x8x32xf32, #tpu.memory_space<vmem>>, %arg2: memref<4x1x32xf32, #tpu.memory_space<vmem>>, %arg3: memref<32x96xf32, #tpu.memory_space<vmem>>, %arg4: memref<1x96xf32, #tpu.memory_space<vmem>>, %arg5: memref<256x32xf32, #tpu.memory_space<vmem>>, %arg6: memref<32x256xf32, #tpu.memory_space<vmem>>, %arg7: memref<32x32xf32, #tpu.memory_space<vmem>>, %arg8: memref<1x32xf32, #tpu.memory_space<vmem>>, %arg9: memref<1x32xf32, #tpu.memory_space<vmem>>, %arg10: memref<1x32xf32, #tpu.memory_space<vmem>>, %arg11: memref<32x64xf32, #tpu.memory_space<vmem>>, %arg12: memref<1x64xf32, #tpu.memory_space<vmem>>, %arg13: memref<64x32xf32, #tpu.memory_space<vmem>>, %arg14: memref<1x32xf32, #tpu.memory_space<vmem>>, %arg15: memref<1x32xf32, #tpu.memory_space<vmem>>, %arg16: memref<1x32xf32, #tpu.memory_space<vmem>>, %arg17: memref<4x8x32xf32, #tpu.memory_space<vmem>>) attributes {dimension_semantics = [#tpu.dimension_semantics<parallel>], iteration_bounds = array<i64: 1>, scalar_prefetch = 0 : i64, scratch_operands = 0 : i64, tpu.core_type = #tpu.core_type<tc>, window_params = [{transform_indices = @transform_0, window_bounds = array<i64: 4, 8, 32>}, {transform_indices = @transform_1, window_bounds = array<i64: 4, 1, 32>}, {pipeline_mode = #tpu.pipeline_mode<synchronous>, transform_indices = @transform_2, window_bounds = array<i64: 32, 96>}, {pipeline_mode = #tpu.pipeline_mode<synchronous>, transform_indices = @transform_3, window_bounds = array<i64: 1, 96>}, {pipeline_mode = #tpu.pipeline_mode<synchronous>, transform_indices = @transform_4, window_bounds = array<i64: 256, 32>}, {pipeline_mode = #tpu.pipeline_mode<synchronous>, transform_indices = @transform_5, window_bounds = array<i64: 32, 256>}, {pipeline_mode = #tpu.pipeline_mode<synchronous>, transform_indices = @transform_6, window_bounds = array<i64: 32, 32>}, {pipeline_mode = #tpu.pipeline_mode<synchronous>, transform_indices = @transform_7, window_bounds = array<i64: 1, 32>}, {pipeline_mode = #tpu.pipeline_mode<synchronous>, transform_indices = @transform_8, window_bounds = array<i64: 1, 32>}, {pipeline_mode = #tpu.pipeline_mode<synchronous>, transform_indices = @transform_9, window_bounds = array<i64: 1, 32>}, {pipeline_mode = #tpu.pipeline_mode<synchronous>, transform_indices = @transform_10, window_bounds = array<i64: 32, 64>}, {pipeline_mode = #tpu.pipeline_mode<synchronous>, transform_indices = @transform_11, window_bounds = array<i64: 1, 64>}, {pipeline_mode = #tpu.pipeline_mode<synchronous>, transform_indices = @transform_12, window_bounds = array<i64: 64, 32>}, {pipeline_mode = #tpu.pipeline_mode<synchronous>, transform_indices = @transform_13, window_bounds = array<i64: 1, 32>}, {pipeline_mode = #tpu.pipeline_mode<synchronous>, transform_indices = @transform_14, window_bounds = array<i64: 1, 32>}, {pipeline_mode = #tpu.pipeline_mode<synchronous>, transform_indices = @transform_15, window_bounds = array<i64: 1, 32>}, {transform_indices = @transform_16, window_bounds = array<i64: 4, 8, 32>}]} {
    %c0 = arith.constant 0 : index
    %c0_0 = arith.constant 0 : index
    %c0_1 = arith.constant 0 : index
    %0 = vector.load %arg1[%c0, %c0_0, %c0_1] : memref<4x8x32xf32, #tpu.memory_space<vmem>>, vector<4x8x32xf32>
    %1 = vector.shape_cast %0 : vector<4x8x32xf32> to vector<32x32xf32>
    %c0_2 = arith.constant 0 : index
    %c0_3 = arith.constant 0 : index
    %c0_4 = arith.constant 0 : index
    %2 = vector.load %arg2[%c0_2, %c0_3, %c0_4] : memref<4x1x32xf32, #tpu.memory_space<vmem>>, vector<4x1x32xf32>
    %c0_5 = arith.constant 0 : index
    %c0_6 = arith.constant 0 : index
    %3 = vector.load %arg3[%c0_5, %c0_6] : memref<32x96xf32, #tpu.memory_space<vmem>>, vector<32x96xf32>
    %4 = arith.truncf %1 : vector<32x32xf32> to vector<32x32xbf16>
    %5 = arith.truncf %3 : vector<32x96xf32> to vector<32x96xbf16>
    %6 = arith.extf %4 : vector<32x32xbf16> to vector<32x32xf32>
    %7 = arith.subf %1, %6 : vector<32x32xf32>
    %8 = arith.truncf %7 : vector<32x32xf32> to vector<32x32xbf16>
    %9 = arith.extf %5 : vector<32x96xbf16> to vector<32x96xf32>
    %10 = arith.subf %3, %9 : vector<32x96xf32>
    %11 = arith.truncf %10 : vector<32x96xf32> to vector<32x96xbf16>
    %cst = arith.constant dense<0.000000e+00> : vector<32x96xf32>
    %12 = tpu.matmul %4, %5, %cst {dimension_numbers = #tpu.dot_dimension_numbers<[1], [0], [0], [1], [0, 0, 1, 1], [], []>} : vector<32x32xbf16>, vector<32x96xbf16>, vector<32x96xf32> -> vector<32x96xf32>
    %cst_7 = arith.constant dense<0.000000e+00> : vector<32x96xf32>
    %13 = tpu.matmul %8, %5, %cst_7 {dimension_numbers = #tpu.dot_dimension_numbers<[1], [0], [0], [1], [0, 0, 1, 1], [], []>} : vector<32x32xbf16>, vector<32x96xbf16>, vector<32x96xf32> -> vector<32x96xf32>
    %14 = arith.addf %12, %13 : vector<32x96xf32>
    %cst_8 = arith.constant dense<0.000000e+00> : vector<32x96xf32>
    %15 = tpu.matmul %4, %11, %cst_8 {dimension_numbers = #tpu.dot_dimension_numbers<[1], [0], [0], [1], [0, 0, 1, 1], [], []>} : vector<32x32xbf16>, vector<32x96xbf16>, vector<32x96xf32> -> vector<32x96xf32>
    %16 = arith.addf %14, %15 : vector<32x96xf32>
    %c0_9 = arith.constant 0 : index
    %c0_10 = arith.constant 0 : index
    %17 = vector.load %arg4[%c0_9, %c0_10] : memref<1x96xf32, #tpu.memory_space<vmem>>, vector<1x96xf32>
    %18 = vector.broadcast %17 : vector<1x96xf32> to vector<32x96xf32>
    %19 = arith.addf %16, %18 : vector<32x96xf32>
    %20 = vector.extract_strided_slice %19 {offsets = [0, 0], sizes = [32, 32], strides = [1, 1]} : vector<32x96xf32> to vector<32x32xf32>
    %21 = vector.shape_cast %20 : vector<32x32xf32> to vector<4x8x32xf32>
    %22 = vector.extract_strided_slice %19 {offsets = [0, 32], sizes = [32, 32], strides = [1, 1]} : vector<32x96xf32> to vector<32x32xf32>
    %23 = vector.shape_cast %22 : vector<32x32xf32> to vector<4x8x32xf32>
    %24 = vector.extract_strided_slice %19 {offsets = [0, 64], sizes = [32, 32], strides = [1, 1]} : vector<32x96xf32> to vector<32x32xf32>
    %25 = vector.shape_cast %24 : vector<32x32xf32> to vector<4x8x32xf32>
    %26 = vector.extract_strided_slice %23 {offsets = [0, 0, 0], sizes = [4, 1, 32], strides = [1, 1, 1]} : vector<4x8x32xf32> to vector<4x1x32xf32>
    %27 = vector.broadcast %26 : vector<4x1x32xf32> to vector<4x8x32xf32>
    %28 = arith.mulf %21, %27 : vector<4x8x32xf32>
    %29 = vector.extract_strided_slice %23 {offsets = [0, 1, 0], sizes = [4, 1, 32], strides = [1, 1, 1]} : vector<4x8x32xf32> to vector<4x1x32xf32>
    %30 = vector.broadcast %29 : vector<4x1x32xf32> to vector<4x8x32xf32>
    %31 = arith.mulf %21, %30 : vector<4x8x32xf32>
    %32 = vector.extract_strided_slice %23 {offsets = [0, 2, 0], sizes = [4, 1, 32], strides = [1, 1, 1]} : vector<4x8x32xf32> to vector<4x1x32xf32>
    %33 = vector.broadcast %32 : vector<4x1x32xf32> to vector<4x8x32xf32>
    %34 = arith.mulf %21, %33 : vector<4x8x32xf32>
    %35 = vector.extract_strided_slice %23 {offsets = [0, 3, 0], sizes = [4, 1, 32], strides = [1, 1, 1]} : vector<4x8x32xf32> to vector<4x1x32xf32>
    %36 = vector.broadcast %35 : vector<4x1x32xf32> to vector<4x8x32xf32>
    %37 = arith.mulf %21, %36 : vector<4x8x32xf32>
    %38 = vector.extract_strided_slice %23 {offsets = [0, 4, 0], sizes = [4, 1, 32], strides = [1, 1, 1]} : vector<4x8x32xf32> to vector<4x1x32xf32>
    %39 = vector.broadcast %38 : vector<4x1x32xf32> to vector<4x8x32xf32>
    %40 = arith.mulf %21, %39 : vector<4x8x32xf32>
    %41 = vector.extract_strided_slice %23 {offsets = [0, 5, 0], sizes = [4, 1, 32], strides = [1, 1, 1]} : vector<4x8x32xf32> to vector<4x1x32xf32>
    %42 = vector.broadcast %41 : vector<4x1x32xf32> to vector<4x8x32xf32>
    %43 = arith.mulf %21, %42 : vector<4x8x32xf32>
    %44 = vector.extract_strided_slice %23 {offsets = [0, 6, 0], sizes = [4, 1, 32], strides = [1, 1, 1]} : vector<4x8x32xf32> to vector<4x1x32xf32>
    %45 = vector.broadcast %44 : vector<4x1x32xf32> to vector<4x8x32xf32>
    %46 = arith.mulf %21, %45 : vector<4x8x32xf32>
    %47 = vector.extract_strided_slice %23 {offsets = [0, 7, 0], sizes = [4, 1, 32], strides = [1, 1, 1]} : vector<4x8x32xf32> to vector<4x1x32xf32>
    %48 = vector.broadcast %47 : vector<4x1x32xf32> to vector<4x8x32xf32>
    %49 = arith.mulf %21, %48 : vector<4x8x32xf32>
    %50 = tpu.concatenate %28, %31, %34, %37, %40, %43, %46, %49 in 2 : vector<4x8x32xf32>, vector<4x8x32xf32>, vector<4x8x32xf32>, vector<4x8x32xf32>, vector<4x8x32xf32>, vector<4x8x32xf32>, vector<4x8x32xf32>, vector<4x8x32xf32> -> vector<4x8x256xf32>
    %51 = vector.shape_cast %50 : vector<4x8x256xf32> to vector<32x256xf32>
    %c0_11 = arith.constant 0 : index
    %c0_12 = arith.constant 0 : index
    %52 = vector.load %arg5[%c0_11, %c0_12] : memref<256x32xf32, #tpu.memory_space<vmem>>, vector<256x32xf32>
    %53 = arith.truncf %51 : vector<32x256xf32> to vector<32x256xbf16>
    %54 = arith.truncf %52 : vector<256x32xf32> to vector<256x32xbf16>
    %55 = arith.extf %53 : vector<32x256xbf16> to vector<32x256xf32>
    %56 = arith.subf %51, %55 : vector<32x256xf32>
    %57 = arith.truncf %56 : vector<32x256xf32> to vector<32x256xbf16>
    %58 = arith.extf %54 : vector<256x32xbf16> to vector<256x32xf32>
    %59 = arith.subf %52, %58 : vector<256x32xf32>
    %60 = arith.truncf %59 : vector<256x32xf32> to vector<256x32xbf16>
    %cst_13 = arith.constant dense<0.000000e+00> : vector<32x32xf32>
    %61 = tpu.matmul %53, %54, %cst_13 {dimension_numbers = #tpu.dot_dimension_numbers<[1], [0], [0], [1], [0, 0, 1, 1], [], []>} : vector<32x256xbf16>, vector<256x32xbf16>, vector<32x32xf32> -> vector<32x32xf32>
    %cst_14 = arith.constant dense<0.000000e+00> : vector<32x32xf32>
    %62 = tpu.matmul %57, %54, %cst_14 {dimension_numbers = #tpu.dot_dimension_numbers<[1], [0], [0], [1], [0, 0, 1, 1], [], []>} : vector<32x256xbf16>, vector<256x32xbf16>, vector<32x32xf32> -> vector<32x32xf32>
    %63 = arith.addf %61, %62 : vector<32x32xf32>
    %cst_15 = arith.constant dense<0.000000e+00> : vector<32x32xf32>
    %64 = tpu.matmul %53, %60, %cst_15 {dimension_numbers = #tpu.dot_dimension_numbers<[1], [0], [0], [1], [0, 0, 1, 1], [], []>} : vector<32x256xbf16>, vector<256x32xbf16>, vector<32x32xf32> -> vector<32x32xf32>
    %65 = arith.addf %63, %64 : vector<32x32xf32>
    %66 = vector.shape_cast %65 : vector<32x32xf32> to vector<4x8x32xf32>
    %67 = vector.broadcast %2 : vector<4x1x32xf32> to vector<4x8x32xf32>
    %68 = arith.addf %66, %67 : vector<4x8x32xf32>
    %cst_16 = arith.constant dense<0xFF800000> : vector<4x8xf32>
    %69 = vector.multi_reduction <maximumf>, %68, %cst_16 [2] : vector<4x8x32xf32> to vector<4x8xf32>
    %70 = vector.shape_cast %69 : vector<4x8xf32> to vector<4x8x1xf32>
    %71 = vector.broadcast %70 : vector<4x8x1xf32> to vector<4x8x32xf32>
    %72 = arith.subf %68, %71 : vector<4x8x32xf32>
    %73 = math.exp %72 : vector<4x8x32xf32>
    %74 = vector.shape_cast %73 : vector<4x8x32xf32> to vector<32x32xf32>
    %c0_17 = arith.constant 0 : index
    %c0_18 = arith.constant 0 : index
    %75 = vector.load %arg6[%c0_17, %c0_18] : memref<32x256xf32, #tpu.memory_space<vmem>>, vector<32x256xf32>
    %76 = arith.truncf %74 : vector<32x32xf32> to vector<32x32xbf16>
    %77 = arith.truncf %75 : vector<32x256xf32> to vector<32x256xbf16>
    %78 = arith.extf %76 : vector<32x32xbf16> to vector<32x32xf32>
    %79 = arith.subf %74, %78 : vector<32x32xf32>
    %80 = arith.truncf %79 : vector<32x32xf32> to vector<32x32xbf16>
    %81 = arith.extf %77 : vector<32x256xbf16> to vector<32x256xf32>
    %82 = arith.subf %75, %81 : vector<32x256xf32>
    %83 = arith.truncf %82 : vector<32x256xf32> to vector<32x256xbf16>
    %cst_19 = arith.constant dense<0.000000e+00> : vector<32x256xf32>
    %84 = tpu.matmul %76, %77, %cst_19 {dimension_numbers = #tpu.dot_dimension_numbers<[1], [0], [0], [1], [0, 0, 1, 1], [], []>} : vector<32x32xbf16>, vector<32x256xbf16>, vector<32x256xf32> -> vector<32x256xf32>
    %cst_20 = arith.constant dense<0.000000e+00> : vector<32x256xf32>
    %85 = tpu.matmul %80, %77, %cst_20 {dimension_numbers = #tpu.dot_dimension_numbers<[1], [0], [0], [1], [0, 0, 1, 1], [], []>} : vector<32x32xbf16>, vector<32x256xbf16>, vector<32x256xf32> -> vector<32x256xf32>
    %86 = arith.addf %84, %85 : vector<32x256xf32>
    %cst_21 = arith.constant dense<0.000000e+00> : vector<32x256xf32>
    %87 = tpu.matmul %76, %83, %cst_21 {dimension_numbers = #tpu.dot_dimension_numbers<[1], [0], [0], [1], [0, 0, 1, 1], [], []>} : vector<32x32xbf16>, vector<32x256xbf16>, vector<32x256xf32> -> vector<32x256xf32>
    %88 = arith.addf %86, %87 : vector<32x256xf32>
    %89 = vector.shape_cast %88 : vector<32x256xf32> to vector<4x8x256xf32>
    %90 = vector.extract_strided_slice %25 {offsets = [0, 0, 0], sizes = [4, 1, 32], strides = [1, 1, 1]} : vector<4x8x32xf32> to vector<4x1x32xf32>
    %91 = vector.extract_strided_slice %25 {offsets = [0, 1, 0], sizes = [4, 1, 32], strides = [1, 1, 1]} : vector<4x8x32xf32> to vector<4x1x32xf32>
    %92 = vector.extract_strided_slice %25 {offsets = [0, 2, 0], sizes = [4, 1, 32], strides = [1, 1, 1]} : vector<4x8x32xf32> to vector<4x1x32xf32>
    %93 = vector.extract_strided_slice %25 {offsets = [0, 3, 0], sizes = [4, 1, 32], strides = [1, 1, 1]} : vector<4x8x32xf32> to vector<4x1x32xf32>
    %94 = vector.extract_strided_slice %25 {offsets = [0, 4, 0], sizes = [4, 1, 32], strides = [1, 1, 1]} : vector<4x8x32xf32> to vector<4x1x32xf32>
    %95 = vector.extract_strided_slice %25 {offsets = [0, 5, 0], sizes = [4, 1, 32], strides = [1, 1, 1]} : vector<4x8x32xf32> to vector<4x1x32xf32>
    %96 = vector.extract_strided_slice %25 {offsets = [0, 6, 0], sizes = [4, 1, 32], strides = [1, 1, 1]} : vector<4x8x32xf32> to vector<4x1x32xf32>
    %97 = vector.extract_strided_slice %25 {offsets = [0, 7, 0], sizes = [4, 1, 32], strides = [1, 1, 1]} : vector<4x8x32xf32> to vector<4x1x32xf32>
    %98 = tpu.concatenate %90, %91, %92, %93, %94, %95, %96, %97 in 2 : vector<4x1x32xf32>, vector<4x1x32xf32>, vector<4x1x32xf32>, vector<4x1x32xf32>, vector<4x1x32xf32>, vector<4x1x32xf32>, vector<4x1x32xf32>, vector<4x1x32xf32> -> vector<4x1x256xf32>
    %99 = vector.broadcast %98 : vector<4x1x256xf32> to vector<4x8x256xf32>
    %100 = arith.mulf %89, %99 : vector<4x8x256xf32>
    %101 = vector.extract_strided_slice %100 {offsets = [0, 0, 0], sizes = [4, 8, 128], strides = [1, 1, 1]} : vector<4x8x256xf32> to vector<4x8x128xf32>
    %102 = vector.extract_strided_slice %100 {offsets = [0, 0, 128], sizes = [4, 8, 128], strides = [1, 1, 1]} : vector<4x8x256xf32> to vector<4x8x128xf32>
    %103 = arith.addf %101, %102 : vector<4x8x128xf32>
    %104 = vector.extract_strided_slice %103 {offsets = [0, 0, 0], sizes = [4, 8, 64], strides = [1, 1, 1]} : vector<4x8x128xf32> to vector<4x8x64xf32>
    %105 = vector.extract_strided_slice %103 {offsets = [0, 0, 64], sizes = [4, 8, 64], strides = [1, 1, 1]} : vector<4x8x128xf32> to vector<4x8x64xf32>
    %106 = arith.addf %104, %105 : vector<4x8x64xf32>
    %107 = vector.extract_strided_slice %106 {offsets = [0, 0, 0], sizes = [4, 8, 32], strides = [1, 1, 1]} : vector<4x8x64xf32> to vector<4x8x32xf32>
    %108 = vector.extract_strided_slice %106 {offsets = [0, 0, 32], sizes = [4, 8, 32], strides = [1, 1, 1]} : vector<4x8x64xf32> to vector<4x8x32xf32>
    %109 = arith.addf %107, %108 : vector<4x8x32xf32>
    %110 = vector.extract_strided_slice %89 {offsets = [0, 0, 0], sizes = [4, 8, 128], strides = [1, 1, 1]} : vector<4x8x256xf32> to vector<4x8x128xf32>
    %111 = vector.extract_strided_slice %89 {offsets = [0, 0, 128], sizes = [4, 8, 128], strides = [1, 1, 1]} : vector<4x8x256xf32> to vector<4x8x128xf32>
    %112 = arith.addf %110, %111 : vector<4x8x128xf32>
    %113 = vector.extract_strided_slice %112 {offsets = [0, 0, 0], sizes = [4, 8, 64], strides = [1, 1, 1]} : vector<4x8x128xf32> to vector<4x8x64xf32>
    %114 = vector.extract_strided_slice %112 {offsets = [0, 0, 64], sizes = [4, 8, 64], strides = [1, 1, 1]} : vector<4x8x128xf32> to vector<4x8x64xf32>
    %115 = arith.addf %113, %114 : vector<4x8x64xf32>
    %116 = vector.extract_strided_slice %115 {offsets = [0, 0, 0], sizes = [4, 8, 32], strides = [1, 1, 1]} : vector<4x8x64xf32> to vector<4x8x32xf32>
    %117 = vector.extract_strided_slice %115 {offsets = [0, 0, 32], sizes = [4, 8, 32], strides = [1, 1, 1]} : vector<4x8x64xf32> to vector<4x8x32xf32>
    %118 = arith.addf %116, %117 : vector<4x8x32xf32>
    %119 = arith.divf %109, %118 : vector<4x8x32xf32>
    %120 = vector.shape_cast %119 : vector<4x8x32xf32> to vector<32x32xf32>
    %c0_22 = arith.constant 0 : index
    %c0_23 = arith.constant 0 : index
    %121 = vector.load %arg7[%c0_22, %c0_23] : memref<32x32xf32, #tpu.memory_space<vmem>>, vector<32x32xf32>
    %122 = arith.truncf %120 : vector<32x32xf32> to vector<32x32xbf16>
    %123 = arith.truncf %121 : vector<32x32xf32> to vector<32x32xbf16>
    %124 = arith.extf %122 : vector<32x32xbf16> to vector<32x32xf32>
    %125 = arith.subf %120, %124 : vector<32x32xf32>
    %126 = arith.truncf %125 : vector<32x32xf32> to vector<32x32xbf16>
    %127 = arith.extf %123 : vector<32x32xbf16> to vector<32x32xf32>
    %128 = arith.subf %121, %127 : vector<32x32xf32>
    %129 = arith.truncf %128 : vector<32x32xf32> to vector<32x32xbf16>
    %cst_24 = arith.constant dense<0.000000e+00> : vector<32x32xf32>
    %130 = tpu.matmul %122, %123, %cst_24 {dimension_numbers = #tpu.dot_dimension_numbers<[1], [0], [0], [1], [0, 0, 1, 1], [], []>} : vector<32x32xbf16>, vector<32x32xbf16>, vector<32x32xf32> -> vector<32x32xf32>
    %cst_25 = arith.constant dense<0.000000e+00> : vector<32x32xf32>
    %131 = tpu.matmul %126, %123, %cst_25 {dimension_numbers = #tpu.dot_dimension_numbers<[1], [0], [0], [1], [0, 0, 1, 1], [], []>} : vector<32x32xbf16>, vector<32x32xbf16>, vector<32x32xf32> -> vector<32x32xf32>
    %132 = arith.addf %130, %131 : vector<32x32xf32>
    %cst_26 = arith.constant dense<0.000000e+00> : vector<32x32xf32>
    %133 = tpu.matmul %122, %129, %cst_26 {dimension_numbers = #tpu.dot_dimension_numbers<[1], [0], [0], [1], [0, 0, 1, 1], [], []>} : vector<32x32xbf16>, vector<32x32xbf16>, vector<32x32xf32> -> vector<32x32xf32>
    %134 = arith.addf %132, %133 : vector<32x32xf32>
    %c0_27 = arith.constant 0 : index
    %c0_28 = arith.constant 0 : index
    %135 = vector.load %arg8[%c0_27, %c0_28] : memref<1x32xf32, #tpu.memory_space<vmem>>, vector<1x32xf32>
    %136 = vector.broadcast %135 : vector<1x32xf32> to vector<32x32xf32>
    %137 = arith.addf %134, %136 : vector<32x32xf32>
    %c0_29 = arith.constant 0 : index
    %c0_30 = arith.constant 0 : index
    %138 = vector.load %arg9[%c0_29, %c0_30] : memref<1x32xf32, #tpu.memory_space<vmem>>, vector<1x32xf32>
    %c0_31 = arith.constant 0 : index
    %c0_32 = arith.constant 0 : index
    %139 = vector.load %arg10[%c0_31, %c0_32] : memref<1x32xf32, #tpu.memory_space<vmem>>, vector<1x32xf32>
    %cst_33 = arith.constant dense<0.000000e+00> : vector<32xf32>
    %140 = vector.multi_reduction <add>, %137, %cst_33 [1] : vector<32x32xf32> to vector<32xf32>
    %141 = vector.shape_cast %140 : vector<32xf32> to vector<32x1xf32>
    %cst_34 = arith.constant 3.200000e+01 : f32
    %142 = vector.broadcast %cst_34 : f32 to vector<32x1xf32>
    %143 = arith.divf %141, %142 : vector<32x1xf32>
    %144 = vector.broadcast %143 : vector<32x1xf32> to vector<32x32xf32>
    %145 = arith.subf %137, %144 : vector<32x32xf32>
    %146 = arith.mulf %145, %145 : vector<32x32xf32>
    %cst_35 = arith.constant dense<0.000000e+00> : vector<32xf32>
    %147 = vector.multi_reduction <add>, %146, %cst_35 [1] : vector<32x32xf32> to vector<32xf32>
    %148 = vector.shape_cast %147 : vector<32xf32> to vector<32x1xf32>
    %cst_36 = arith.constant 0.0322580636 : f32
    %149 = vector.broadcast %cst_36 : f32 to vector<32x1xf32>
    %150 = arith.mulf %148, %149 : vector<32x1xf32>
    %151 = math.sqrt %150 : vector<32x1xf32>
    %cst_37 = arith.constant 9.99999997E-7 : f32
    %152 = vector.broadcast %cst_37 : f32 to vector<32x1xf32>
    %153 = arith.addf %151, %152 : vector<32x1xf32>
    %154 = vector.broadcast %153 : vector<32x1xf32> to vector<32x32xf32>
    %155 = arith.divf %145, %154 : vector<32x32xf32>
    %156 = vector.broadcast %138 : vector<1x32xf32> to vector<32x32xf32>
    %157 = arith.mulf %156, %155 : vector<32x32xf32>
    %158 = vector.broadcast %139 : vector<1x32xf32> to vector<32x32xf32>
    %159 = arith.addf %157, %158 : vector<32x32xf32>
    %160 = arith.addf %1, %159 : vector<32x32xf32>
    %c0_38 = arith.constant 0 : index
    %c0_39 = arith.constant 0 : index
    %161 = vector.load %arg11[%c0_38, %c0_39] : memref<32x64xf32, #tpu.memory_space<vmem>>, vector<32x64xf32>
    %162 = arith.truncf %160 : vector<32x32xf32> to vector<32x32xbf16>
    %163 = arith.truncf %161 : vector<32x64xf32> to vector<32x64xbf16>
    %164 = arith.extf %162 : vector<32x32xbf16> to vector<32x32xf32>
    %165 = arith.subf %160, %164 : vector<32x32xf32>
    %166 = arith.truncf %165 : vector<32x32xf32> to vector<32x32xbf16>
    %167 = arith.extf %163 : vector<32x64xbf16> to vector<32x64xf32>
    %168 = arith.subf %161, %167 : vector<32x64xf32>
    %169 = arith.truncf %168 : vector<32x64xf32> to vector<32x64xbf16>
    %cst_40 = arith.constant dense<0.000000e+00> : vector<32x64xf32>
    %170 = tpu.matmul %162, %163, %cst_40 {dimension_numbers = #tpu.dot_dimension_numbers<[1], [0], [0], [1], [0, 0, 1, 1], [], []>} : vector<32x32xbf16>, vector<32x64xbf16>, vector<32x64xf32> -> vector<32x64xf32>
    %cst_41 = arith.constant dense<0.000000e+00> : vector<32x64xf32>
    %171 = tpu.matmul %166, %163, %cst_41 {dimension_numbers = #tpu.dot_dimension_numbers<[1], [0], [0], [1], [0, 0, 1, 1], [], []>} : vector<32x32xbf16>, vector<32x64xbf16>, vector<32x64xf32> -> vector<32x64xf32>
    %172 = arith.addf %170, %171 : vector<32x64xf32>
    %cst_42 = arith.constant dense<0.000000e+00> : vector<32x64xf32>
    %173 = tpu.matmul %162, %169, %cst_42 {dimension_numbers = #tpu.dot_dimension_numbers<[1], [0], [0], [1], [0, 0, 1, 1], [], []>} : vector<32x32xbf16>, vector<32x64xbf16>, vector<32x64xf32> -> vector<32x64xf32>
    %174 = arith.addf %172, %173 : vector<32x64xf32>
    %c0_43 = arith.constant 0 : index
    %c0_44 = arith.constant 0 : index
    %175 = vector.load %arg12[%c0_43, %c0_44] : memref<1x64xf32, #tpu.memory_space<vmem>>, vector<1x64xf32>
    %176 = vector.broadcast %175 : vector<1x64xf32> to vector<32x64xf32>
    %177 = arith.addf %174, %176 : vector<32x64xf32>
    %cst_45 = arith.constant 0.000000e+00 : f32
    %178 = vector.broadcast %cst_45 : f32 to vector<32x64xf32>
    %179 = arith.maximumf %177, %178 : vector<32x64xf32>
    %c0_46 = arith.constant 0 : index
    %c0_47 = arith.constant 0 : index
    %180 = vector.load %arg13[%c0_46, %c0_47] : memref<64x32xf32, #tpu.memory_space<vmem>>, vector<64x32xf32>
    %181 = arith.truncf %179 : vector<32x64xf32> to vector<32x64xbf16>
    %182 = arith.truncf %180 : vector<64x32xf32> to vector<64x32xbf16>
    %183 = arith.extf %181 : vector<32x64xbf16> to vector<32x64xf32>
    %184 = arith.subf %179, %183 : vector<32x64xf32>
    %185 = arith.truncf %184 : vector<32x64xf32> to vector<32x64xbf16>
    %186 = arith.extf %182 : vector<64x32xbf16> to vector<64x32xf32>
    %187 = arith.subf %180, %186 : vector<64x32xf32>
    %188 = arith.truncf %187 : vector<64x32xf32> to vector<64x32xbf16>
    %cst_48 = arith.constant dense<0.000000e+00> : vector<32x32xf32>
    %189 = tpu.matmul %181, %182, %cst_48 {dimension_numbers = #tpu.dot_dimension_numbers<[1], [0], [0], [1], [0, 0, 1, 1], [], []>} : vector<32x64xbf16>, vector<64x32xbf16>, vector<32x32xf32> -> vector<32x32xf32>
    %cst_49 = arith.constant dense<0.000000e+00> : vector<32x32xf32>
    %190 = tpu.matmul %185, %182, %cst_49 {dimension_numbers = #tpu.dot_dimension_numbers<[1], [0], [0], [1], [0, 0, 1, 1], [], []>} : vector<32x64xbf16>, vector<64x32xbf16>, vector<32x32xf32> -> vector<32x32xf32>
    %191 = arith.addf %189, %190 : vector<32x32xf32>
    %cst_50 = arith.constant dense<0.000000e+00> : vector<32x32xf32>
    %192 = tpu.matmul %181, %188, %cst_50 {dimension_numbers = #tpu.dot_dimension_numbers<[1], [0], [0], [1], [0, 0, 1, 1], [], []>} : vector<32x64xbf16>, vector<64x32xbf16>, vector<32x32xf32> -> vector<32x32xf32>
    %193 = arith.addf %191, %192 : vector<32x32xf32>
    %c0_51 = arith.constant 0 : index
    %c0_52 = arith.constant 0 : index
    %194 = vector.load %arg14[%c0_51, %c0_52] : memref<1x32xf32, #tpu.memory_space<vmem>>, vector<1x32xf32>
    %195 = vector.broadcast %194 : vector<1x32xf32> to vector<32x32xf32>
    %196 = arith.addf %193, %195 : vector<32x32xf32>
    %c0_53 = arith.constant 0 : index
    %c0_54 = arith.constant 0 : index
    %197 = vector.load %arg15[%c0_53, %c0_54] : memref<1x32xf32, #tpu.memory_space<vmem>>, vector<1x32xf32>
    %c0_55 = arith.constant 0 : index
    %c0_56 = arith.constant 0 : index
    %198 = vector.load %arg16[%c0_55, %c0_56] : memref<1x32xf32, #tpu.memory_space<vmem>>, vector<1x32xf32>
    %cst_57 = arith.constant dense<0.000000e+00> : vector<32xf32>
    %199 = vector.multi_reduction <add>, %196, %cst_57 [1] : vector<32x32xf32> to vector<32xf32>
    %200 = vector.shape_cast %199 : vector<32xf32> to vector<32x1xf32>
    %cst_58 = arith.constant 3.200000e+01 : f32
    %201 = vector.broadcast %cst_58 : f32 to vector<32x1xf32>
    %202 = arith.divf %200, %201 : vector<32x1xf32>
    %203 = vector.broadcast %202 : vector<32x1xf32> to vector<32x32xf32>
    %204 = arith.subf %196, %203 : vector<32x32xf32>
    %205 = arith.mulf %204, %204 : vector<32x32xf32>
    %cst_59 = arith.constant dense<0.000000e+00> : vector<32xf32>
    %206 = vector.multi_reduction <add>, %205, %cst_59 [1] : vector<32x32xf32> to vector<32xf32>
    %207 = vector.shape_cast %206 : vector<32xf32> to vector<32x1xf32>
    %cst_60 = arith.constant 0.0322580636 : f32
    %208 = vector.broadcast %cst_60 : f32 to vector<32x1xf32>
    %209 = arith.mulf %207, %208 : vector<32x1xf32>
    %210 = math.sqrt %209 : vector<32x1xf32>
    %cst_61 = arith.constant 9.99999997E-7 : f32
    %211 = vector.broadcast %cst_61 : f32 to vector<32x1xf32>
    %212 = arith.addf %210, %211 : vector<32x1xf32>
    %213 = vector.broadcast %212 : vector<32x1xf32> to vector<32x32xf32>
    %214 = arith.divf %204, %213 : vector<32x32xf32>
    %215 = vector.broadcast %197 : vector<1x32xf32> to vector<32x32xf32>
    %216 = arith.mulf %215, %214 : vector<32x32xf32>
    %217 = vector.broadcast %198 : vector<1x32xf32> to vector<32x32xf32>
    %218 = arith.addf %216, %217 : vector<32x32xf32>
    %219 = arith.addf %160, %218 : vector<32x32xf32>
    %220 = vector.shape_cast %219 : vector<32x32xf32> to vector<4x8x32xf32>
    %c0_62 = arith.constant 0 : index
    %c0_63 = arith.constant 0 : index
    %c0_64 = arith.constant 0 : index
    %221 = vector.load %arg17[%c0_62, %c0_63, %c0_64] : memref<4x8x32xf32, #tpu.memory_space<vmem>>, vector<4x8x32xf32>
    tpu.vector_store %arg17[%c0_62, %c0_63, %c0_64], %220 {strides = array<i32>} : memref<4x8x32xf32, #tpu.memory_space<vmem>>, vector<4x8x32xf32>,
    return
  }
  func.func @transform_0(%arg0: i32) -> (i32, i32, i32) {
    %c0_i32 = arith.constant 0 : i32
    %c0_i32_0 = arith.constant 0 : i32
    %c0_i32_1 = arith.constant 0 : i32
    return %arg0, %c0_i32, %c0_i32_0 : i32, i32, i32
  }
  func.func @transform_1(%arg0: i32) -> (i32, i32, i32) {
    %c0_i32 = arith.constant 0 : i32
    %c0_i32_0 = arith.constant 0 : i32
    %c0_i32_1 = arith.constant 0 : i32
    return %arg0, %c0_i32, %c0_i32_0 : i32, i32, i32
  }
  func.func @transform_2(%arg0: i32) -> (i32, i32) {
    %c0_i32 = arith.constant 0 : i32
    %c0_i32_0 = arith.constant 0 : i32
    %c0_i32_1 = arith.constant 0 : i32
    return %c0_i32, %c0_i32_0 : i32, i32
  }
  func.func @transform_3(%arg0: i32) -> (i32, i32) {
    %c0_i32 = arith.constant 0 : i32
    %c0_i32_0 = arith.constant 0 : i32
    %c0_i32_1 = arith.constant 0 : i32
    return %c0_i32, %c0_i32_0 : i32, i32
  }
  func.func @transform_4(%arg0: i32) -> (i32, i32) {
    %c0_i32 = arith.constant 0 : i32
    %c0_i32_0 = arith.constant 0 : i32
    %c0_i32_1 = arith.constant 0 : i32
    return %c0_i32, %c0_i32_0 : i32, i32
  }
  func.func @transform_5(%arg0: i32) -> (i32, i32) {
    %c0_i32 = arith.constant 0 : i32
    %c0_i32_0 = arith.constant 0 : i32
    %c0_i32_1 = arith.constant 0 : i32
    return %c0_i32, %c0_i32_0 : i32, i32
  }
  func.func @transform_6(%arg0: i32) -> (i32, i32) {
    %c0_i32 = arith.constant 0 : i32
    %c0_i32_0 = arith.constant 0 : i32
    %c0_i32_1 = arith.constant 0 : i32
    return %c0_i32, %c0_i32_0 : i32, i32
  }
  func.func @transform_7(%arg0: i32) -> (i32, i32) {
    %c0_i32 = arith.constant 0 : i32
    %c0_i32_0 = arith.constant 0 : i32
    %c0_i32_1 = arith.constant 0 : i32
    return %c0_i32, %c0_i32_0 : i32, i32
  }
  func.func @transform_8(%arg0: i32) -> (i32, i32) {
    %c0_i32 = arith.constant 0 : i32
    %c0_i32_0 = arith.constant 0 : i32
    %c0_i32_1 = arith.constant 0 : i32
    return %c0_i32, %c0_i32_0 : i32, i32
  }
  func.func @transform_9(%arg0: i32) -> (i32, i32) {
    %c0_i32 = arith.constant 0 : i32
    %c0_i32_0 = arith.constant 0 : i32
    %c0_i32_1 = arith.constant 0 : i32
    return %c0_i32, %c0_i32_0 : i32, i32
  }
  func.func @transform_10(%arg0: i32) -> (i32, i32) {
    %c0_i32 = arith.constant 0 : i32
    %c0_i32_0 = arith.constant 0 : i32
    %c0_i32_1 = arith.constant 0 : i32
    return %c0_i32, %c0_i32_0 : i32, i32
  }
  func.func @transform_11(%arg0: i32) -> (i32, i32) {
    %c0_i32 = arith.constant 0 : i32
    %c0_i32_0 = arith.constant 0 : i32
    %c0_i32_1 = arith.constant 0 : i32
    return %c0_i32, %c0_i32_0 : i32, i32
  }
  func.func @transform_12(%arg0: i32) -> (i32, i32) {
    %c0_i32 = arith.constant 0 : i32
    %c0_i32_0 = arith.constant 0 : i32
    %c0_i32_1 = arith.constant 0 : i32
    return %c0_i32, %c0_i32_0 : i32, i32
  }
  func.func @transform_13(%arg0: i32) -> (i32, i32) {
    %c0_i32 = arith.constant 0 : i32
    %c0_i32_0 = arith.constant 0 : i32
    %c0_i32_1 = arith.constant 0 : i32
    return %c0_i32, %c0_i32_0 : i32, i32
  }
  func.func @transform_14(%arg0: i32) -> (i32, i32) {
    %c0_i32 = arith.constant 0 : i32
    %c0_i32_0 = arith.constant 0 : i32
    %c0_i32_1 = arith.constant 0 : i32
    return %c0_i32, %c0_i32_0 : i32, i32
  }
  func.func @transform_15(%arg0: i32) -> (i32, i32) {
    %c0_i32 = arith.constant 0 : i32
    %c0_i32_0 = arith.constant 0 : i32
    %c0_i32_1 = arith.constant 0 : i32
    return %c0_i32, %c0_i32_0 : i32, i32
  }
  func.func @transform_16(%arg0: i32) -> (i32, i32, i32) {
    %c0_i32 = arith.constant 0 : i32
    %c0_i32_0 = arith.constant 0 : i32
    %c0_i32_1 = arith.constant 0 : i32
    return %arg0, %c0_i32, %c0_i32_0 : i32, i32, i32
  }
}

</mosaic_0001>

<bundles_post_ra>
// kernel: tpu_custom_call.1
= control target key start
LH: loop header
LB: loop body
LE: loop exit
PB: predicated region body
PF: predicated region fallthrough
CT: control target
= control target key end

     0   :  { %s3936_s0 = inlined_call_operand.vmem [shape: f32[4,8,32], index: 0, kind: input, shape index: {}]   ;;  %s3937_s1 = inlined_call_operand.vmem [shape: f32[4,1,32], index: 1, kind: input, shape index: {}]   ;;  %s3938_s2 = inlined_call_operand.vmem [shape: f32[32,96], index: 2, kind: input, shape index: {}]   ;;  %s3939_s3 = inlined_call_operand.vmem [shape: f32[1,96], index: 3, kind: input, shape index: {}]   ;;  %s3940_s4 = inlined_call_operand.vmem [shape: f32[256,32], index: 4, kind: input, shape index: {}]   ;;  %s3941_s5 = inlined_call_operand.vmem [shape: f32[32,256], index: 5, kind: input, shape index: {}]   ;;  %s3942_s6 = inlined_call_operand.vmem [shape: f32[32,32], index: 6, kind: input, shape index: {}]   ;;  %s3943_s7 = inlined_call_operand.vmem [shape: f32[1,32], index: 7, kind: input, shape index: {}]   ;;  %s3944_s8 = inlined_call_operand.vmem [shape: f32[1,32], index: 8, kind: input, shape index: {}]   ;;  %s3945_s9 = inlined_call_operand.vmem [shape: f32[1,32], index: 9, kind: input, shape index: {}]   ;;  %s3946_s10 = inlined_call_operand.vmem [shape: f32[32,64], index: 10, kind: input, shape index: {}]   ;;  %s3947_s11 = inlined_call_operand.vmem [shape: f32[1,64], index: 11, kind: input, shape index: {}]   ;;  %s3948_s12 = inlined_call_operand.vmem [shape: f32[64,32], index: 12, kind: input, shape index: {}]   ;;  %s3949_s13 = inlined_call_operand.vmem [shape: f32[1,32], index: 13, kind: input, shape index: {}]   ;;  %s3950_s14 = inlined_call_operand.vmem [shape: f32[1,32], index: 14, kind: input, shape index: {}]   ;;  %s3951_s15 = inlined_call_operand.vmem [shape: f32[1,32], index: 15, kind: input, shape index: {}]   ;;  %s3952_s16 = inlined_call_operand.hbm [shape: f32[4,8,32], index: 16, kind: output, shape index: {}]  }
   0x1   :  { %3960 = sst [smem:[#allocation9_spill]] %s3936_s0 }
   0x2   :  { %v65_v0 = vld [vmem:[%s3938_s2 + $0x10] sm:$0xff]  ;;  %v66_v1 = vld [vmem:[%s3938_s2 + $0x18] sm:$0xff]  ;;  %v63_v2 = vld [vmem:[%s3938_s2] sm:$0xff]  ;;  %s3961_s0 = sld [smem:[#allocation9_spill]] }
   0x3   :  { %v70_v3 = vpack.c.bf16 %v66_v1, %v65_v0  ;;  %v64_v4 = vld [vmem:[%s3938_s2 + $0x8] sm:$0xff] }
   0x4   :  { %v69_v7 = vpack.c.bf16 %v64_v4, %v63_v2 }
   0x8   :  { %v55_v5 = vld [vmem:[%s3961_s0] sm:$0xff]  ;;  %v56_v6 = vld [vmem:[%s3961_s0 + $0x8] sm:$0xff]  ;;  %v57_v9 = vld [vmem:[%s3961_s0 + $0x10] sm:$0xff] }
   0x9   :  { %v67_v8 = vpack.c.bf16 %v56_v6, %v55_v5  ;;  %v58_v10 = vld [vmem:[%s3961_s0 + $0x18] sm:$0xff] }
   0xa   :  { %21 = vsyncpa [#allocation3], 0  ;;  %2565 = vmatprep.subr.bf16.mxu0 %v70_v3  ;;  %2573 = vmatprep.subr.bf16.mxu1 %v70_v3  ;;  %vm91_vm0 = vcmask 261120   ;;  %v68_v11 = vpack.c.bf16 %v58_v10, %v57_v9  ;;  %v83_v12 = vunpack.c.l.bf16 %v70_v3  ;;  %v84_v13 = vunpack.c.h.bf16 %v70_v3  ;;  %v2391_v47 = vld [vmem:[%s3939_s3] ss:$0 sm:$0xff]  ;;  %s2754_s24 = smov 96  }
   0xb   :  { %2566 = vmatpush3.bf16.msra.mxu0 %v70_v3  ;;  %2574 = vmatpush3.bf16.msra.mxu1 %v70_v3  ;;  %v71_v14 = vunpack.c.l.bf16 %v67_v8  ;;  %v72_v15 = vunpack.c.h.bf16 %v67_v8  ;;  %v81_v16 = vunpack.c.l.bf16 %v69_v7  ;;  %v82_v17 = vunpack.c.h.bf16 %v69_v7  ;;  %s2755_s20 = smov 32   ;;  %s2756_s2 = smov 64  }
   0xc   :  { %2567 = vmatprep.subr.bf16.mxu0 %v69_v7  ;;  %2575 = vmatprep.subr.bf16.mxu1 %v69_v7  ;;  %v73_v18 = vunpack.c.l.bf16 %v68_v11  ;;  %v74_v19 = vunpack.c.h.bf16 %v68_v11  ;;  %v87_v20 = vsub.f32 %v65_v0, %v83_v12  ;;  %v88_v21 = vsub.f32 %v66_v1, %v84_v13 }
   0xd   :  { %v75_v22 = vsub.f32 %v55_v5, %v71_v14  ;;  %v76_v23 = vsub.f32 %v56_v6, %v72_v15  ;;  %2577 = vmatprep.mubr.msk.bf16.mxu1 %vm91_vm0, %v67_v8  ;;  %v85_v24 = vsub.f32 %v63_v2, %v81_v16  ;;  %v86_v25 = vsub.f32 %v64_v4, %v82_v17 }
   0xe   :  { %v77_v26 = vsub.f32 %v57_v9, %v73_v18  ;;  %v78_v27 = vsub.f32 %v58_v10, %v74_v19  ;;  %v90_v28 = vpack.c.bf16 %v88_v21, %v87_v20  ;;  %v266_v37 = vlaneseq }
   0xf   :  { %2568 = vmatpush3.bf16.msra.mxu0 %v69_v7  ;;  %2576 = vmatpush3.bf16.msra.mxu1 %v69_v7  ;;  %v79_v29 = vpack.c.bf16 %v76_v23, %v75_v22  ;;  %v89_v31 = vpack.c.bf16 %v86_v25, %v85_v24  ;;  %vm654_vm1 = vcmask 523264   ;;  %vm659_vm2 = vcmask 785408  }
  0x10   :  { %v80_v30 = vpack.c.bf16 %v78_v27, %v77_v26  ;;  %2581 = vmatprep.subr.bf16.mxu0 %v90_v28  ;;  %v2876_v41 = vshrl.u32 %v266_v37, 7 }
  0x11   :  { %2569 = vmatprep.mubr.msk.bf16.mxu0 %vm91_vm0, %v79_v29 }
  0x12   :  { %2570 = vmatmul.mubr.msk.bf16.vlgmr.msra.gmra.mxu0 %vm91_vm0, %v80_v30  ;;  %2578 = vmatmul.mubr.msk.bf16.vlgmr.msra.gmra.mxu1 %vm91_vm0, %v68_v11  ;;  %v448_v49 = vsub.s32 5, %v2876_v41  ;;  %v304_v53 = vsub.s32 1, %v2876_v41  ;;  %v484_v59 = vsub.s32 6, %v2876_v41  ;;  %v340_v63 = vsub.s32 2, %v2876_v41 }
  0x13   :  { %2582 = vmatpush3.bf16.msra.mxu0 %v90_v28  ;;  %2585 = vmatprep.mubr.msk.bf16.mxu0 %vm91_vm0, %v67_v8  ;;  %v520_v2 = vsub.s32 7, %v2876_v41  ;;  %v376_v6 = vsub.s32 3, %v2876_v41  ;;  %v412_v25 = vsub.s32 4, %v2876_v41  ;;  %v2947_v28 = vsub.s32 0, %v2876_v41  ;;  %v2987_v41 = vld [vmem:[%s3940_s4 + $0x70] sm:$0xff] }
  0x14   :  { %2583 = vmatprep.subr.bf16.mxu0 %v89_v31 }
  0x15   :  { %3963 = vst [vmem:[#allocation6_spill] sm:$0xff] %v2947_v28 }
  0x17   :  { %2584 = vmatpush3.bf16.msra.mxu0 %v89_v31 }
  0x1a   :  { %2586 = vmatmul.mubr.msk.bf16.vlgmr.msra.gmra.mxu0 %vm91_vm0, %v68_v11 }
  0xd2   :  { %v2571_v32 = vpop.f32.mrf.mxu0  ;;  %v2579_v33 = vpop.f32.mrf.mxu1 }
  0xd3   :  { %v196_v5 = vadd.f32 %v2579_v33, %v2571_v32 }
  0xd4   :  { %v132_v34 = vpop.f32.mrf.mxu0  ;;  %v187_v35 = vpop.f32.mrf.mxu1 }
  0xd5   :  { %v188_v42 = vadd.f32 %v187_v35, %v132_v34  ;;  %v2970_v35 = vld [vmem:[%s3940_s4 + $0xf0] sm:$0xff] }
  0xd6   :  { %v2572_v36 = vpop.f32.mrf.mxu0  ;;  %v2580_v38 = vpop.f32.mrf.mxu1 }
  0xd7   :  { %v199_v45 = vadd.f32 %v2580_v38, %v2572_v36  ;;  %v2975_v36 = vld [vmem:[%s3940_s4 + $0xf8] sm:$0xff] }
  0xd8   :  { %v135_v39 = vpop.f32.mrf.mxu0  ;;  %v190_v43 = vpop.f32.mrf.mxu1  ;;  %v2979_v37 = vpack.c.bf16 %v2975_v36, %v2970_v35 }
  0xd9   :  { %v191_v50 = vadd.f32 %v190_v43, %v135_v39  ;;  %v2997_v43 = vld [vmem:[%s3940_s4 + $0xe0] sm:$0xff] }
  0xda   :  { %v2587_v40 = vpop.f32.mrf.mxu0  ;;  %2467 = vmatprep.subr.bf16.mxu0 %v2979_v37  ;;  %2439 = vmatprep.subr.bf16.mxu1 %v2979_v37 }
  0xdb   :  { %v253_v7 = vadd.f32 %v2587_v40, %v196_v5 }
  0xdc   :  { %v236_v44 = vpop.f32.mrf.mxu0 }
  0xdd   :  { %v251_v46 = vadd.f32 %v236_v44, %v188_v42  ;;  %v2913_v10 = vadd.f32 %v2391_v47, %v253_v7  ;;  %v2992_v42 = vld [vmem:[%s3940_s4 + $0x78] sm:$0xff]  ;;  %v3090_v7 = vld [vmem:[%s3940_s4 + $0x40] sm:$0xff] }
  0xde   :  { %v2588_v48 = vpop.f32.mrf.mxu0  ;;  %v3002_v44 = vpack.c.bf16 %v2992_v42, %v2987_v41 }
  0xdf   :  { %v2882_v51 = vadd.f32 %v2391_v47, %v251_v46  ;;  %v254_v52 = vadd.f32 %v2588_v48, %v199_v45  ;;  %v457_v13 = vrot.slane %v2913_v10, %v448_v49  ;;  %v313_v15 = vrot.slane %v2913_v10, %v304_v53  ;;  %v3007_v45 = vld [vmem:[%s3940_s4 + $0xe8] sm:$0xff] }
  0xe0   :  { %v239_v54 = vpop.f32.mrf.mxu0  ;;  %v493_v17 = vrot.slane %v2913_v10, %v484_v59  ;;  %v349_v19 = vrot.slane %v2913_v10, %v340_v63  ;;  %v529_v21 = vrot.slane %v2913_v10, %v520_v2  ;;  %v385_v23 = vrot.slane %v2913_v10, %v376_v6  ;;  %2468 = vmatpush3.bf16.msra.mxu0 %v3002_v44 }
  0xe1   :  { %3962 = vst [vmem:[#allocation5_spill] sm:$0xff] %v2882_v51  ;;  %v2885_v55 = vadd.f32 %v2391_v47, %v254_v52  ;;  %v252_v56 = vadd.f32 %v239_v54, %v191_v50  ;;  %v449_v57 = vrot.slane %v2882_v51, %v448_v49  ;;  %v305_v58 = vrot.slane %v2882_v51, %v304_v53  ;;  %v3022_v50 = vld [vmem:[%s3940_s4 + $0x60] sm:$0xff]  ;;  %v3027_v52 = vld [vmem:[%s3940_s4 + $0x68] sm:$0xff] }
  0xe2   :  { %v485_v61 = vrot.slane %v2882_v51, %v484_v59  ;;  %v341_v0 = vrot.slane %v2882_v51, %v340_v63  ;;  %v521_v3 = vrot.slane %v2882_v51, %v520_v2  ;;  %v377_v8 = vrot.slane %v2882_v51, %v376_v6  ;;  %2440 = vmatpush3.bf16.msra.mxu1 %v3002_v44 }
  0xe3   :  { %466 = vrot.lane.b32.xlu0 %v449_v57, %s2754_s24  ;;  %322 = vrot.lane.b32.xlu1 %v305_v58, %s2754_s24  ;;  %v2892_v60 = vadd.f32 %v2391_v47, %v252_v56  ;;  %v461_v62 = vrot.slane %v2885_v55, %v448_v49  ;;  %v317_v16 = vrot.slane %v2885_v55, %v304_v53  ;;  %v3043_v56 = vld [vmem:[%s3940_s4 + $0xd8] sm:$0xff] }
  0xe4   :  { %v497_v18 = vrot.slane %v2885_v55, %v484_v59  ;;  %v353_v20 = vrot.slane %v2885_v55, %v340_v63  ;;  %v533_v22 = vrot.slane %v2885_v55, %v520_v2  ;;  %v389_v24 = vrot.slane %v2885_v55, %v376_v6 }
  0xe5   :  { %v309_v1 = vrot.slane %v2892_v60, %v304_v53  ;;  %v489_v4 = vrot.slane %v2892_v60, %v484_v59  ;;  %v345_v9 = vrot.slane %v2892_v60, %v340_v63  ;;  %v453_v11 = vrot.slane %v2892_v60, %v448_v49  ;;  %v3032_v53 = vld [vmem:[%s3940_s4 + $0xd0] sm:$0xff]  ;;  %v3061_v63 = vld [vmem:[%s3940_s4 + $0x58] sm:$0xff] }
  0xe6   :  { %v525_v12 = vrot.slane %v2892_v60, %v520_v2  ;;  %v381_v14 = vrot.slane %v2892_v60, %v376_v6  ;;  %v413_v26 = vrot.slane %v2882_v51, %v412_v25  ;;  %v425_v27 = vrot.slane %v2885_v55, %v412_v25  ;;  %v3077_v2 = vld [vmem:[%s3940_s4 + $0xc8] sm:$0xff] }
  0xe7   :  { %502 = vrot.lane.b32.xlu0 %v485_v61, %s2754_s24  ;;  %472 = vrot.lane.b32.xlu1 %v461_v62, %s2754_s24  ;;  %v269_v29 = vrot.slane %v2882_v51, %v2947_v28  ;;  %v281_v30 = vrot.slane %v2885_v55, %v2947_v28  ;;  %v421_v31 = vrot.slane %v2913_v10, %v412_v25  ;;  %v3056_v62 = vld [vmem:[%s3940_s4 + $0x50] sm:$0xff] }
  0xe8   :  { %v417_v32 = vrot.slane %v2892_v60, %v412_v25  ;;  %v277_v33 = vrot.slane %v2913_v10, %v2947_v28  ;;  %v273_v34 = vrot.slane %v2892_v60, %v2947_v28  ;;  %v3013_v48 = vpack.c.bf16 %v3007_v45, %v2997_v43 }
  0xe9   :  { %v3038_v54 = vpack.c.bf16 %v3027_v52, %v3022_v50  ;;  %v3047_v59 = vpack.c.bf16 %v3043_v56, %v3032_v53 }
  0xea   :  { %2469 = vmatprep.subr.bf16.mxu0 %v3013_v48  ;;  %2441 = vmatprep.subr.bf16.mxu1 %v3013_v48 }
  0xeb   :  { %358 = vrot.lane.b32.xlu0 %v341_v0, %s2754_s24  ;;  %324 = vrot.lane.b32.xlu1 %v309_v1, %s2754_s24  ;;  %v3066_v0 = vld [vmem:[%s3940_s4 + $0xc0] sm:$0xff]  ;;  %v3072_v1 = vpack.c.bf16 %v3061_v63, %v3056_v62 }
  0xec   :  { %2470 = vmatpush3.bf16.msra.mxu0 %v3038_v54  ;;  %2442 = vmatpush3.bf16.msra.mxu1 %v3038_v54  ;;  %v3081_v5 = vpack.c.bf16 %v3077_v2, %v3066_v0 }
  0xed   :  { %2471 = vmatprep.subr.bf16.mxu0 %v3047_v59  ;;  %2443 = vmatprep.subr.bf16.mxu1 %v3047_v59 }
  0xef   :  { %538 = vrot.lane.b32.xlu0 %v521_v3, %s2754_s24  ;;  %504 = vrot.lane.b32.xlu1 %v489_v4, %s2754_s24 }
  0xf0   :  { %2472 = vmatpush3.bf16.msra.mxu0 %v3072_v1  ;;  %2444 = vmatpush3.bf16.msra.mxu1 %v3072_v1 }
  0xf1   :  { %2473 = vmatprep.subr.bf16.mxu0 %v3081_v5  ;;  %2445 = vmatprep.subr.bf16.mxu1 %v3081_v5 }
  0xf3   :  { %394 = vrot.lane.b32.xlu0 %v377_v8, %s2754_s24  ;;  %360 = vrot.lane.b32.xlu1 %v345_v9, %s2754_s24  ;;  %v3095_v8 = vld [vmem:[%s3940_s4 + $0x48] sm:$0xff]  ;;  %v3100_v9 = vld [vmem:[%s3940_s4 + $0xb0] sm:$0xff] }
  0xf7   :  { %468 = vrot.lane.b32.xlu0 %v453_v11, %s2754_s24  ;;  %540 = vrot.lane.b32.xlu1 %v525_v12, %s2754_s24  ;;  %v3106_v11 = vpack.c.bf16 %v3095_v8, %v3090_v7  ;;  %v3111_v12 = vld [vmem:[%s3940_s4 + $0xb8] sm:$0xff] }
  0xf9   :  { %2474 = vmatpush3.bf16.msra.mxu0 %v3106_v11  ;;  %2446 = vmatpush3.bf16.msra.mxu1 %v3106_v11 }
  0xfb   :  { %470 = vrot.lane.b32.xlu0 %v457_v13, %s2754_s24  ;;  %396 = vrot.lane.b32.xlu1 %v381_v14, %s2754_s24 }
  0xff   :  { %326 = vrot.lane.b32.xlu0 %v313_v15, %s2754_s24  ;;  %328 = vrot.lane.b32.xlu1 %v317_v16, %s2754_s24  ;;  %v3115_v15 = vpack.c.bf16 %v3111_v12, %v3100_v9 }
 0x101   :  { %2475 = vmatprep.subr.bf16.mxu0 %v3115_v15  ;;  %2447 = vmatprep.subr.bf16.mxu1 %v3115_v15 }
 0x103   :  { %506 = vrot.lane.b32.xlu0 %v493_v17, %s2754_s24  ;;  %508 = vrot.lane.b32.xlu1 %v497_v18, %s2754_s24  ;;  %v3124_v17 = vld [vmem:[%s3940_s4 + $0x30] sm:$0xff]  ;;  %v3129_v18 = vld [vmem:[%s3940_s4 + $0x38] sm:$0xff] }
 0x107   :  { %362 = vrot.lane.b32.xlu0 %v349_v19, %s2754_s24  ;;  %364 = vrot.lane.b32.xlu1 %v353_v20, %s2754_s24  ;;  %v3134_v19 = vld [vmem:[%s3940_s4 + $0xa0] sm:$0xff]  ;;  %v3140_v20 = vpack.c.bf16 %v3129_v18, %v3124_v17 }
 0x109   :  { %2476 = vmatpush3.bf16.msra.mxu0 %v3140_v20  ;;  %2448 = vmatpush3.bf16.msra.mxu1 %v3140_v20 }
 0x10b   :  { %542 = vrot.lane.b32.xlu0 %v529_v21, %s2754_s24  ;;  %544 = vrot.lane.b32.xlu1 %v533_v22, %s2754_s24  ;;  %v3145_v21 = vld [vmem:[%s3940_s4 + $0xa8] sm:$0xff] }
 0x10f   :  { %398 = vrot.lane.b32.xlu0 %v385_v23, %s2754_s24  ;;  %400 = vrot.lane.b32.xlu1 %v389_v24, %s2754_s24  ;;  %v3149_v23 = vpack.c.bf16 %v3145_v21, %v3134_v19 }
 0x111   :  { %2477 = vmatprep.subr.bf16.mxu0 %v3149_v23  ;;  %2449 = vmatprep.subr.bf16.mxu1 %v3149_v23 }
 0x113   :  { %430 = vrot.lane.b32.xlu0 %v413_v26, %s2754_s24  ;;  %436 = vrot.lane.b32.xlu1 %v425_v27, %s2754_s24  ;;  %v3159_v27 = vld [vmem:[%s3940_s4 + $0x20] sm:$0xff] }
 0x117   :  { %286 = vrot.lane.b32.xlu0 %v269_v29, %s2754_s24  ;;  %292 = vrot.lane.b32.xlu1 %v281_v30, %s2754_s24  ;;  %v3164_v29 = vld [vmem:[%s3940_s4 + $0x28] sm:$0xff]  ;;  %v3169_v30 = vld [vmem:[%s3940_s4 + $0x90] sm:$0xff] }
 0x11b   :  { %434 = vrot.lane.b32.xlu0 %v421_v31, %s2754_s24  ;;  %432 = vrot.lane.b32.xlu1 %v417_v32, %s2754_s24  ;;  %v3176_v31 = vpack.c.bf16 %v3164_v29, %v3159_v27  ;;  %v3181_v32 = vld [vmem:[%s3940_s4 + $0x98] sm:$0xff] }
 0x11d   :  { %2478 = vmatpush3.bf16.msra.mxu0 %v3176_v31  ;;  %2450 = vmatpush3.bf16.msra.mxu1 %v3176_v31 }
 0x11f   :  { %290 = vrot.lane.b32.xlu0 %v277_v33, %s2754_s24  ;;  %288 = vrot.lane.b32.xlu1 %v273_v34, %s2754_s24  ;;  %v3185_v34 = vpack.c.bf16 %v3181_v32, %v3169_v30 }
 0x121   :  { %2479 = vmatprep.subr.bf16.mxu0 %v3185_v34  ;;  %2451 = vmatprep.subr.bf16.mxu1 %v3185_v34 }
 0x155   :  { %v467_v38 = vpop.permute.xlu0 %466  ;;  %v323_v39 = vpop.permute.xlu1 %322 }
 0x156   :  { %v478_v40 = vmul.f32 %v467_v38, %v2882_v51  ;;  %v334_v49 = vmul.f32 %v323_v39, %v2882_v51 }
 0x158   :  { %606 = vrot.lane.b32.xlu0 %v478_v40, %s2755_s20 }
 0x159   :  { %v503_v46 = vpop.permute.xlu0 %502  ;;  %v3009_v47 = vpop.permute.xlu1 %472 }
 0x15a   :  { %v514_v61 = vmul.f32 %v503_v46, %v2882_v51 }
 0x15c   :  { %558 = vrot.lane.b32.xlu0 %v334_v49, %s2755_s20 }
 0x15d   :  { %v359_v57 = vpop.permute.xlu0 %358  ;;  %v325_v58 = vpop.permute.xlu1 %324 }
 0x15e   :  { %v370_v6 = vmul.f32 %v359_v57, %v2882_v51  ;;  %v335_v38 = vmul.f32 %v325_v58, %v2892_v60  ;;  %v3202_v58 = vld [vmem:[%s3940_s4 + $0x10] sm:$0xff] }
 0x160   :  { %622 = vrot.lane.b32.xlu0 %v514_v61, %s2756_s2  ;;  %v3207_v61 = vld [vmem:[%s3940_s4 + $0x18] sm:$0xff] }
 0x161   :  { %v539_v3 = vpop.permute.xlu0 %538  ;;  %v505_v4 = vpop.permute.xlu1 %504 }
 0x162   :  { %v550_v16 = vmul.f32 %v539_v3, %v2882_v51  ;;  %v515_v49 = vmul.f32 %v505_v4, %v2892_v60  ;;  %v3211_v4 = vpack.c.bf16 %v3207_v61, %v3202_v58 }
 0x164   :  { %574 = vrot.lane.b32.xlu0 %v370_v6, %s2756_s2  ;;  %v3216_v6 = vld [vmem:[%s3940_s4 + $0x80] sm:$0xff]  ;;  %2480 = vmatpush3.bf16.msra.mxu0 %v3211_v4 }
 0x165   :  { %v395_v13 = vpop.permute.xlu0 %394  ;;  %v361_v14 = vpop.permute.xlu1 %360  ;;  %2452 = vmatpush3.bf16.msra.mxu1 %v3211_v4 }
 0x166   :  { %v406_v24 = vmul.f32 %v395_v13, %v2882_v51  ;;  %v3221_v13 = vld [vmem:[%s3940_s4 + $0x88] sm:$0xff] }
 0x168   :  { %638 = vrot.lane.b32.xlu0 %v550_v16, %s2754_s24  ;;  %v371_v16 = vmul.f32 %v361_v14, %v2892_v60  ;;  %v3237_v14 = vld [vmem:[%s3940_s4] sm:$0xff] }
 0x169   :  { %v469_v22 = vpop.permute.xlu0 %468  ;;  %v541_v26 = vpop.permute.xlu1 %540  ;;  %3964 = vst [vmem:[#allocation7_spill] sm:$0xff] %v3237_v14 }
 0x16a   :  { %v479_v25 = vmul.f32 %v469_v22, %v2892_v60 }
 0x16c   :  { %590 = vrot.lane.b32.xlu0 %v406_v24, %s2754_s24  ;;  %608 = vrot.lane.b32.xlu1 %v479_v25, %s2755_s20  ;;  %v3227_v24 = vpack.c.bf16 %v3221_v13, %v3216_v6 }
 0x16d   :  { %v471_v33 = vpop.permute.xlu0 %470  ;;  %v397_v40 = vpop.permute.xlu1 %396 }
 0x16e   :  { %v480_v39 = vmul.f32 %v471_v33, %v2913_v10  ;;  %2481 = vmatprep.subr.bf16.mxu0 %v3227_v24  ;;  %2453 = vmatprep.subr.bf16.mxu1 %v3227_v24 }
 0x170   :  { %610 = vrot.lane.b32.xlu0 %v480_v39, %s2755_s20  ;;  %560 = vrot.lane.b32.xlu1 %v335_v38, %s2755_s20  ;;  %v3242_v38 = vld [vmem:[%s3940_s4 + $0x8] sm:$0xff]  ;;  %v551_v39 = vmul.f32 %v541_v26, %v2892_v60 }
 0x171   :  { %v327_v46 = vpop.permute.xlu0 %326  ;;  %v329_v25 = vpop.permute.xlu1 %328  ;;  %3965 = vst [vmem:[#allocation8_spill] sm:$0xff] %v3242_v38 }
 0x172   :  { %v336_v57 = vmul.f32 %v327_v46, %v2913_v10 }
 0x174   :  { %562 = vrot.lane.b32.xlu0 %v336_v57, %s2755_s20  ;;  %624 = vrot.lane.b32.xlu1 %v515_v49, %s2756_s2  ;;  %v3249_v49 = vpack.c.bf16 %v3242_v38, %v3237_v14  ;;  %v778_v57 = vunpack.c.l.bf16 %v2979_v37  ;;  %v777_v14 = vunpack.c.h.bf16 %v3013_v48 }
 0x175   :  { %v507_v3 = vpop.permute.xlu0 %506  ;;  %v509_v28 = vpop.permute.xlu1 %508 }
 0x176   :  { %v516_v22 = vmul.f32 %v507_v3, %v2913_v10  ;;  %v779_v3 = vunpack.c.h.bf16 %v2979_v37  ;;  %2482 = vmatpush3.bf16.msra.mxu0 %v3249_v49  ;;  %2454 = vmatpush3.bf16.msra.mxu1 %v3249_v49 }
 0x178   :  { %626 = vrot.lane.b32.xlu0 %v516_v22, %s2756_s2  ;;  %576 = vrot.lane.b32.xlu1 %v371_v16, %s2756_s2  ;;  %v762_v16 = vunpack.c.l.bf16 %v3002_v44  ;;  %v763_v22 = vunpack.c.h.bf16 %v3002_v44  ;;  %v811_v51 = vsub.f32 %v2975_v36, %v779_v3  ;;  %v776_v44 = vunpack.c.l.bf16 %v3013_v48 }
 0x179   :  { %v363_v33 = vpop.permute.xlu0 %362  ;;  %v481_v48 = vmul.f32 %v3009_v47, %v2885_v55 }
 0x17a   :  { %v372_v46 = vmul.f32 %v363_v33, %v2913_v10  ;;  %v407_v33 = vmul.f32 %v397_v40, %v2892_v60  ;;  %v3264_v37 = vsub.f32 %v2987_v41, %v762_v16  ;;  %v3267_v38 = vsub.f32 %v2992_v42, %v763_v22  ;;  %v365_v16 = vpop.permute.xlu1 %364 }
 0x17b   :  { %v3278_v42 = vsub.f32 %v2997_v43, %v776_v44  ;;  %v774_v22 = vunpack.c.l.bf16 %v3047_v59 }
 0x17c   :  { %578 = vrot.lane.b32.xlu0 %v372_v46, %s2756_s2  ;;  %640 = vrot.lane.b32.xlu1 %v551_v39, %s2754_s24  ;;  %v810_v39 = vsub.f32 %v2970_v35, %v778_v57  ;;  %v761_v35 = vunpack.c.h.bf16 %v3038_v54  ;;  %v3281_v57 = vsub.f32 %v3007_v45, %v777_v14  ;;  %v775_v45 = vunpack.c.h.bf16 %v3047_v59 }
 0x17d   :  { %v543_v26 = vpop.permute.xlu0 %542  ;;  %v758_v14 = vunpack.c.l.bf16 %v3072_v1  ;;  %v337_v59 = vmul.f32 %v329_v25, %v2885_v55  ;;  %v757_v25 = vunpack.c.h.bf16 %v3106_v11 }
 0x17e   :  { %v552_v46 = vmul.f32 %v543_v26, %v2913_v10  ;;  %v827_v40 = vpack.c.bf16 %v811_v51, %v810_v39  ;;  %v760_v26 = vunpack.c.l.bf16 %v3038_v54  ;;  %v3290_v54 = vsub.f32 %v3027_v52, %v761_v35 }
 0x17f   :  { %v3303_v52 = vsub.f32 %v3032_v53, %v774_v22 }
 0x180   :  { %642 = vrot.lane.b32.xlu0 %v552_v46, %s2754_s24  ;;  %592 = vrot.lane.b32.xlu1 %v407_v33, %s2754_s24  ;;  %v3287_v51 = vsub.f32 %v3022_v50, %v760_v26  ;;  %v759_v50 = vunpack.c.h.bf16 %v3072_v1  ;;  %v3306_v33 = vsub.f32 %v3043_v56, %v775_v45  ;;  %v3309_v46 = vsub.f32 %v3056_v62, %v758_v14  ;;  %v545_v1 = vpop.permute.xlu1 %544 }
 0x181   :  { %v399_v36 = vpop.permute.xlu0 %398  ;;  %2495 = vmatprep.subr.bf16.mxu1 %v827_v40  ;;  %v517_v56 = vmul.f32 %v509_v28, %v2885_v55  ;;  %v772_v40 = vunpack.c.l.bf16 %v3081_v5  ;;  %v773_v62 = vunpack.c.h.bf16 %v3081_v5  ;;  %v769_v14 = vunpack.c.h.bf16 %v3149_v23 }
 0x182   :  { %v408_v3 = vmul.f32 %v399_v36, %v2913_v10  ;;  %v3313_v39 = vsub.f32 %v3061_v63, %v759_v50  ;;  %v756_v63 = vunpack.c.l.bf16 %v3106_v11  ;;  %v373_v36 = vmul.f32 %v365_v16, %v2885_v55 }
 0x183   :  { %v3327_v26 = vsub.f32 %v3066_v0, %v772_v40  ;;  %v3330_v35 = vsub.f32 %v3077_v2, %v773_v62  ;;  %v770_v11 = vunpack.c.l.bf16 %v3115_v15  ;;  %v771_v0 = vunpack.c.h.bf16 %v3115_v15 }
 0x184   :  { %594 = vrot.lane.b32.xlu0 %v408_v3, %s2754_s24  ;;  %612 = vrot.lane.b32.xlu1 %v481_v48, %s2755_s20  ;;  %v3334_v28 = vsub.f32 %v3090_v7, %v756_v63  ;;  %v3337_v48 = vsub.f32 %v3095_v8, %v757_v25  ;;  %v401_v5 = vpop.permute.xlu1 %400  ;;  %v754_v16 = vunpack.c.l.bf16 %v3140_v20  ;;  %v755_v7 = vunpack.c.h.bf16 %v3140_v20 }
 0x185   :  { %v768_v8 = vunpack.c.l.bf16 %v3149_v23  ;;  %v3350_v22 = vsub.f32 %v3100_v9, %v770_v11  ;;  %v3353_v45 = vsub.f32 %v3111_v12, %v771_v0  ;;  %v752_v15 = vunpack.c.l.bf16 %v3176_v31 }
 0x186   :  { %v553_v50 = vmul.f32 %v545_v1, %v2885_v55  ;;  %v3363_v20 = vsub.f32 %v3129_v18, %v755_v7  ;;  %v3371_v23 = vsub.f32 %v3145_v21, %v769_v14  ;;  %v753_v40 = vunpack.c.h.bf16 %v3176_v31 }
 0x187   :  { %v3368_v12 = vsub.f32 %v3134_v19, %v768_v8  ;;  %v3378_v1 = vsub.f32 %v3159_v27, %v752_v15  ;;  %v766_v18 = vunpack.c.l.bf16 %v3185_v34  ;;  %v767_v62 = vunpack.c.h.bf16 %v3185_v34  ;;  %v3967_v8 = vld [vmem:[#allocation8_spill] sm:$0xff]  ;;  %v431_v15 = vpop.permute.xlu0 %430 }
 0x188   :  { %564 = vrot.lane.b32.xlu1 %v337_v59, %s2755_s20  ;;  %v409_v59 = vmul.f32 %v401_v5, %v2885_v55  ;;  %v3385_v21 = vsub.f32 %v3164_v29, %v753_v40  ;;  %v750_v31 = vunpack.c.l.bf16 %v3211_v4  ;;  %v751_v63 = vunpack.c.h.bf16 %v3211_v4 }
 0x189   :  { %v3390_v25 = vsub.f32 %v3169_v30, %v766_v18  ;;  %v3393_v27 = vsub.f32 %v3181_v32, %v767_v62  ;;  %v765_v34 = vunpack.c.h.bf16 %v3227_v24  ;;  %v748_v4 = vunpack.c.l.bf16 %v3249_v49  ;;  %v3968_v30 = vld [vmem:[#allocation5_spill] sm:$0xff] }
 0x18a   :  { %v3400_v29 = vsub.f32 %v3202_v58, %v750_v31  ;;  %v3403_v11 = vsub.f32 %v3207_v61, %v751_v63  ;;  %v749_v0 = vunpack.c.h.bf16 %v3249_v49  ;;  %v3966_v61 = vld [vmem:[#allocation7_spill] sm:$0xff]  ;;  %v442_v5 = vmul.f32 %v431_v15, %v3968_v30 }
 0x18c   :  { %628 = vrot.lane.b32.xlu1 %v517_v56, %s2756_s2  ;;  %v3360_v56 = vsub.f32 %v3124_v17, %v754_v16  ;;  %v3419_v16 = vsub.f32 %v3966_v61, %v748_v4  ;;  %v3424_v14 = vsub.f32 %v3967_v8, %v749_v0 }
 0x190   :  { %580 = vrot.lane.b32.xlu1 %v373_v36, %s2756_s2  ;;  %v764_v36 = vunpack.c.l.bf16 %v3227_v24  ;;  %v3413_v24 = vsub.f32 %v3221_v13, %v765_v34  ;;  %v287_v13 = vpop.permute.xlu0 %286 }
 0x191   :  { %v298_v44 = vmul.f32 %v287_v13, %v3968_v30 }
 0x192   :  { %v3410_v32 = vsub.f32 %v3216_v6, %v764_v36 }
 0x194   :  { %644 = vrot.lane.b32.xlu1 %v553_v50, %s2754_s24  ;;  %v3428_v50 = vpop.permute.xlu0 %434 }
 0x198   :  { %596 = vrot.lane.b32.xlu1 %v409_v59, %s2754_s24  ;;  %v3430_v49 = vpop.permute.xlu0 %290  ;;  %v3432_v59 = vpop.permute.xlu1 %436 }
 0x19c   :  { %v3434_v18 = vpop.permute.xlu1 %292 }
 0x1a0   :  { %v433_v63 = vpop.permute.xlu1 %432 }
 0x1a1   :  { %v443_v19 = vmul.f32 %v433_v63, %v2892_v60 }
 0x1a4   :  { %v289_v34 = vpop.permute.xlu1 %288 }
 0x1a5   :  { %v299_v47 = vmul.f32 %v289_v34, %v2892_v60 }
 0x1ca   :  { %v607_v40 = vpop.permute.xlu0 %606 }
 0x1cb   :  { %v664_v17 = vsel %vm91_vm0, %v442_v5, %v607_v40 }
 0x1ce   :  { %v559_v62 = vpop.permute.xlu0 %558 }
 0x1cf   :  { %v650_v5 = vsel %vm91_vm0, %v298_v44, %v559_v62 }
 0x1d2   :  { %v623_v31 = vpop.permute.xlu0 %622 }
 0x1d3   :  { %v668_v2 = vsel %vm654_vm1, %v664_v17, %v623_v31 }
 0x1d6   :  { %v575_v36 = vpop.permute.xlu0 %574 }
 0x1d7   :  { %v655_v17 = vsel %vm654_vm1, %v650_v5, %v575_v36 }
 0x1da   :  { %v639_v4 = vpop.permute.xlu0 %638 }
 0x1db   :  { %v672_v43 = vsel %vm659_vm2, %v668_v2, %v639_v4 }
 0x1de   :  { %v609_v0 = vpop.permute.xlu1 %608  ;;  %v591_v8 = vpop.permute.xlu0 %590 }
 0x1df   :  { %v665_v9 = vsel %vm91_vm0, %v443_v19, %v609_v0 }
 0x1e2   :  { %v561_v61 = vpop.permute.xlu1 %560  ;;  %v611_v7 = vpop.permute.xlu0 %610 }
 0x1e3   :  { %v651_v19 = vsel %vm91_vm0, %v299_v47, %v561_v61 }
 0x1e6   :  { %v625_v6 = vpop.permute.xlu1 %624  ;;  %v563_v63 = vpop.permute.xlu0 %562 }
 0x1e7   :  { %v669_v3 = vsel %vm654_vm1, %v665_v9, %v625_v6 }
 0x1ea   :  { %v577_v58 = vpop.permute.xlu1 %576  ;;  %v627_v47 = vpop.permute.xlu0 %626 }
 0x1eb   :  { %v656_v9 = vsel %vm654_vm1, %v651_v19, %v577_v58  ;;  %v3970_v19 = vpack.c.bf16 %v3281_v57, %v3278_v42  ;;  %v3973_v57 = vpack.c.bf16 %v3313_v39, %v3309_v46 }
 0x1ee   :  { %v641_v53 = vpop.permute.xlu1 %640  ;;  %v579_v5 = vpop.permute.xlu0 %578 }
 0x1ef   :  { %v673_v15 = vsel %vm659_vm2, %v669_v3, %v641_v53  ;;  %v660_v53 = vsel %vm659_vm2, %v655_v17, %v591_v8  ;;  %v3971_v17 = vpack.c.bf16 %v3290_v54, %v3287_v51 }
 0x1f0   :  { %v3446_v41 = vpack.c.bf16 %v673_v15, %v672_v43 }
 0x1f2   :  { %v731_v6 = vunpack.c.h.bf16 %v3446_v41  ;;  %909 = vmatprep.mubr.bf16.mxu0 %v3446_v41  ;;  %v593_v13 = vpop.permute.xlu1 %592  ;;  %v729_v2 = vunpack.c.l.bf16 %v3446_v41 }
 0x1f3   :  { %v661_v3 = vsel %vm659_vm2, %v656_v9, %v593_v13  ;;  %v643_v9 = vpop.permute.xlu0 %642  ;;  %v3972_v13 = vpack.c.bf16 %v3306_v33, %v3303_v52  ;;  %v3974_v33 = vpack.c.bf16 %v3330_v35, %v3327_v26  ;;  %v3975_v26 = vpack.c.bf16 %v3337_v48, %v3334_v28 }
 0x1f4   :  { %v739_v40 = vsub.f32 %v673_v15, %v731_v6  ;;  %v3457_v31 = vpack.c.bf16 %v661_v3, %v660_v53  ;;  %v737_v44 = vsub.f32 %v672_v43, %v729_v2  ;;  %v3969_v15 = vpack.c.bf16 %v3267_v38, %v3264_v37 }
 0x1f5   :  { %v445_v2 = vmul.f32 %v3432_v59, %v2885_v55  ;;  %v444_v38 = vmul.f32 %v3428_v50, %v2913_v10  ;;  %v301_v50 = vmul.f32 %v3434_v18, %v2885_v55  ;;  %v3977_v48 = vpack.c.bf16 %v3363_v20, %v3360_v56 }
 0x1f6   :  { %v728_v62 = vunpack.c.l.bf16 %v3457_v31  ;;  %v730_v58 = vunpack.c.h.bf16 %v3457_v31  ;;  %910 = vmatmul.mubr.bf16.vlgmr.msra.gmra.mxu0 %v3457_v31  ;;  %v613_v36 = vpop.permute.xlu1 %612  ;;  %v745_v34 = vpack.c.bf16 %v739_v40, %v737_v44  ;;  %v3980_v56 = vpack.c.bf16 %v3393_v27, %v3390_v25 }
 0x1f7   :  { %v666_v37 = vsel %vm91_vm0, %v444_v38, %v611_v7  ;;  %v667_v42 = vsel %vm91_vm0, %v445_v2, %v613_v36  ;;  %v300_v7 = vmul.f32 %v3430_v49, %v2913_v10  ;;  %v595_v39 = vpop.permute.xlu0 %594  ;;  %v3981_v20 = vpack.c.bf16 %v3403_v11, %v3400_v29 }
 0x1f8   :  { %v736_v4 = vsub.f32 %v660_v53, %v728_v62  ;;  %v738_v0 = vsub.f32 %v661_v3, %v730_v58  ;;  %860 = vmatprep.mubr.bf16.mxu1 %v745_v34  ;;  %v670_v51 = vsel %vm654_vm1, %v666_v37, %v627_v47  ;;  %v3976_v47 = vpack.c.bf16 %v3353_v45, %v3350_v22 }
 0x1f9   :  { %v674_v59 = vsel %vm659_vm2, %v670_v51, %v643_v9  ;;  %v652_v3 = vsel %vm91_vm0, %v300_v7, %v563_v63 }
 0x1fa   :  { %v744_v61 = vpack.c.bf16 %v738_v0, %v736_v4  ;;  %v565_v8 = vpop.permute.xlu1 %564  ;;  %v657_v35 = vsel %vm654_vm1, %v652_v3, %v579_v5  ;;  %v3979_v5 = vpack.c.bf16 %v3385_v21, %v3378_v1 }
 0x1fb   :  { %v653_v40 = vsel %vm91_vm0, %v301_v50, %v565_v8  ;;  %v662_v63 = vsel %vm659_vm2, %v657_v35, %v595_v39 }
 0x1fc   :  { %861 = vmatmul.mubr.bf16.vlgmr.msra.gmra.mxu1 %v744_v61  ;;  %v3978_v61 = vpack.c.bf16 %v3371_v23, %v3368_v12  ;;  %v3982_v12 = vpack.c.bf16 %v3413_v24, %v3410_v32  ;;  %v3983_v23 = vpack.c.bf16 %v3424_v14, %v3419_v16 }
 0x1fd   :  { %2496 = vmatpush3.bf16.msra.mxu1 %v3969_v15 }
 0x1fe   :  { %v629_v43 = vpop.permute.xlu1 %628  ;;  %2497 = vmatprep.subr.bf16.mxu1 %v3970_v19 }
 0x1ff   :  { %v671_v54 = vsel %vm654_vm1, %v667_v42, %v629_v43 }
 0x201   :  { %2498 = vmatpush3.bf16.msra.mxu1 %v3971_v17 }
 0x202   :  { %v581_v6 = vpop.permute.xlu1 %580  ;;  %2499 = vmatprep.subr.bf16.mxu1 %v3972_v13 }
 0x203   :  { %v658_v18 = vsel %vm654_vm1, %v653_v40, %v581_v6 }
 0x205   :  { %2500 = vmatpush3.bf16.msra.mxu1 %v3973_v57  ;;  %v2392_v57 = vld [vmem:[%s3937_s1] ss:$0 sm:$0xff] }
 0x206   :  { %v645_v52 = vpop.permute.xlu1 %644  ;;  %2501 = vmatprep.subr.bf16.mxu1 %v3974_v33 }
 0x207   :  { %v675_v46 = vsel %vm659_vm2, %v671_v54, %v645_v52 }
 0x208   :  { %v711_v53 = vpack.c.bf16 %v675_v46, %v674_v59 }
 0x209   :  { %2502 = vmatpush3.bf16.msra.mxu1 %v3975_v26 }
 0x20a   :  { %v735_v44 = vunpack.c.h.bf16 %v711_v53  ;;  %917 = vmatprep.mubr.bf16.mxu0 %v711_v53  ;;  %v597_v49 = vpop.permute.xlu1 %596  ;;  %2503 = vmatprep.subr.bf16.mxu1 %v3976_v47  ;;  %v733_v62 = vunpack.c.l.bf16 %v711_v53 }
 0x20b   :  { %v663_v58 = vsel %vm659_vm2, %v658_v18, %v597_v49 }
 0x20c   :  { %v743_v36 = vsub.f32 %v675_v46, %v735_v44  ;;  %v710_v34 = vpack.c.bf16 %v663_v58, %v662_v63  ;;  %v741_v28 = vsub.f32 %v674_v59, %v733_v62 }
 0x20d   :  { %2504 = vmatpush3.bf16.msra.mxu1 %v3977_v48 }
 0x20e   :  { %v734_v4 = vunpack.c.h.bf16 %v710_v34  ;;  %918 = vmatmul.mubr.bf16.gmra.mxu0 %v710_v34  ;;  %v747_v0 = vpack.c.bf16 %v743_v36, %v741_v28  ;;  %2505 = vmatprep.subr.bf16.mxu1 %v3978_v61  ;;  %v732_v22 = vunpack.c.l.bf16 %v710_v34 }
 0x210   :  { %v742_v45 = vsub.f32 %v663_v58, %v734_v4  ;;  %868 = vmatprep.mubr.bf16.mxu1 %v747_v0  ;;  %v740_v8 = vsub.f32 %v662_v63, %v732_v22  ;;  %v2394_v58 = vld [vmem:[%s3937_s1 + $0x2] ss:$0 sm:$0xff]  ;;  %v2395_v22 = vld [vmem:[%s3937_s1 + $0x3] ss:$0 sm:$0xff] }
 0x211   :  { %2506 = vmatpush3.bf16.msra.mxu1 %v3979_v5 }
 0x212   :  { %v746_v15 = vpack.c.bf16 %v742_v45, %v740_v8  ;;  %2507 = vmatprep.subr.bf16.mxu1 %v3980_v56  ;;  %v1270_v56 = vrot.slane %v3968_v30, 1 }
 0x214   :  { %869 = vmatmul.mubr.bf16.gmra.mxu1 %v746_v15 }
 0x215   :  { %2508 = vmatpush3.bf16.msra.mxu1 %v3981_v20  ;;  %958 = vmatprep.mubr.bf16.mxu1 %v3446_v41  ;;  %v1271_v20 = vrot.slane %v2892_v60, 1 }
 0x216   :  { %2509 = vmatprep.subr.bf16.mxu1 %v3982_v12  ;;  %v1311_v12 = vrot.slane %v2892_v60, 4 }
 0x219   :  { %2510 = vmatpush3.bf16.msra.mxu1 %v3983_v23  ;;  %v1036_v23 = vld [vmem:[%s3941_s5 + $0x28] sm:$0xff] }
 0x21c   :  { %959 = vmatmul.mubr.bf16.vlgmr.msra.gmra.mxu1 %v3457_v31 }
 0x21d   :  { %966 = vmatprep.mubr.bf16.mxu1 %v711_v53  ;;  %v2393_v53 = vld [vmem:[%s3937_s1 + $0x1] ss:$0 sm:$0xff] }
 0x224   :  { %967 = vmatmul.mubr.bf16.gmra.mxu1 %v710_v34 }
 0x2b6   :  { %v2483_v25 = vpop.f32.mrf.mxu0 }
 0x2b8   :  { %v2484_v29 = vpop.f32.mrf.mxu0 }
 0x2b9   :  { %v2485_v14 = vadd.f32 %v2484_v29, %v2483_v25  ;;  %v1035_v25 = vld [vmem:[%s3941_s5 + $0x20] sm:$0xff] }
 0x2ba   :  { %v2486_v43 = vpop.f32.mrf.mxu0 }
 0x2bc   :  { %v2455_v1 = vpop.f32.mrf.mxu1  ;;  %v2487_v17 = vpop.f32.mrf.mxu0 }
 0x2bd   :  { %v2488_v51 = vadd.f32 %v2487_v17, %v2486_v43 }
 0x2be   :  { %v2456_v21 = vpop.f32.mrf.mxu1 }
 0x2bf   :  { %v2457_v6 = vadd.f32 %v2456_v21, %v2455_v1  ;;  %v1038_v1 = vld [vmem:[%s3941_s5 + $0x38] sm:$0xff] }
 0x2c0   :  { %v2458_v27 = vpop.f32.mrf.mxu1  ;;  %v1044_v21 = vpack.c.bf16 %v1038_v1, %v1036_v23 }
 0x2c1   :  { %v912_v2 = vadd.f32 %v2485_v14, %v2457_v6 }
 0x2c2   :  { %v2459_v11 = vpop.f32.mrf.mxu1  ;;  %1093 = vmatprep.subr.bf16.mxu0 %v1044_v21  ;;  %v1062_v43 = vunpack.c.h.bf16 %v1044_v21 }
 0x2c3   :  { %v2460_v38 = vadd.f32 %v2459_v11, %v2458_v27  ;;  %v1037_v27 = vld [vmem:[%s3941_s5 + $0x30] sm:$0xff]  ;;  %v1060_v11 = vunpack.c.l.bf16 %v1044_v21 }
 0x2c4   :  { %v3577_v29 = vpack.c.bf16 %v1037_v27, %v1035_v25 }
 0x2c5   :  { %v915_v50 = vadd.f32 %v2488_v51, %v2460_v38  ;;  %v1068_v6 = vsub.f32 %v1036_v23, %v1060_v11 }
 0x2c6   :  { %1094 = vmatpush1.bf16.msra.mxu0 %v3577_v29  ;;  %v1059_v17 = vunpack.c.l.bf16 %v3577_v29 }
 0x2ce   :  { %v2489_v24 = vpop.f32.mrf.mxu0 }
 0x2d0   :  { %v2490_v13 = vpop.f32.mrf.mxu0 }
 0x2d1   :  { %v2491_v3 = vadd.f32 %v2490_v13, %v2489_v24  ;;  %v1032_v24 = vld [vmem:[%s3941_s5 + $0x8] sm:$0xff]  ;;  %v1031_v13 = vld [vmem:[%s3941_s5] sm:$0xff] }
 0x2d2   :  { %v2492_v52 = vpop.f32.mrf.mxu0 }
 0x2d4   :  { %v2461_v41 = vpop.f32.mrf.mxu1  ;;  %v2493_v35 = vpop.f32.mrf.mxu0 }
 0x2d5   :  { %v2494_v36 = vadd.f32 %v2493_v35, %v2492_v52 }
 0x2d6   :  { %v2462_v19 = vpop.f32.mrf.mxu1 }
 0x2d7   :  { %v2463_v7 = vadd.f32 %v2462_v19, %v2461_v41  ;;  %v1327_v41 = vrot.slane %v2892_v60, 5  ;;  %v1310_v19 = vrot.slane %v3968_v30, 4 }
 0x2d8   :  { %v2464_v32 = vpop.f32.mrf.mxu1 }
 0x2d9   :  { %v920_v44 = vadd.f32 %v2491_v3, %v2463_v7  ;;  %v1326_v7 = vrot.slane %v3968_v30, 5 }
 0x2da   :  { %v2465_v9 = vpop.f32.mrf.mxu1 }
 0x2db   :  { %v2466_v49 = vadd.f32 %v2465_v9, %v2464_v32  ;;  %v1061_v32 = vunpack.c.h.bf16 %v3577_v29  ;;  %v1034_v9 = vld [vmem:[%s3941_s5 + $0x18] sm:$0xff] }
 0x2dc   :  { %v2511_v16 = vpop.f32.mrf.mxu1  ;;  %v3592_v14 = vpack.c.bf16 %v1034_v9, %v1032_v24 }
 0x2dd   :  { %v923_v4 = vadd.f32 %v2494_v36, %v2466_v49  ;;  %v1069_v38 = vsub.f32 %v1037_v27, %v1061_v32  ;;  %v1329_v49 = vrot.slane %v2885_v55, 5  ;;  %v1351_v36 = vrot.slane %v2892_v60, 7 }
 0x2de   :  { %v2512_v31 = vpop.f32.mrf.mxu1  ;;  %v1056_v51 = vunpack.c.l.bf16 %v3592_v14  ;;  %1095 = vmatprep.subr.bf16.mxu0 %v3592_v14 }
 0x2df   :  { %v2513_v37 = vadd.f32 %v2512_v31, %v2511_v16  ;;  %v1070_v16 = vsub.f32 %v1038_v1, %v1062_v43  ;;  %v1033_v31 = vld [vmem:[%s3941_s5 + $0x10] sm:$0xff] }
 0x2e0   :  { %v2514_v42 = vpop.f32.mrf.mxu1 }
 0x2e1   :  { %v975_v54 = vadd.f32 %v2513_v37, %v912_v2  ;;  %v1067_v2 = vsub.f32 %v1035_v25, %v1059_v17  ;;  %v3601_v37 = vpack.c.bf16 %v1033_v31, %v1031_v13 }
 0x2e2   :  { %v2515_v33 = vpop.f32.mrf.mxu1 }
 0x2e3   :  { %v2516_v59 = vadd.f32 %v2515_v33, %v2514_v42  ;;  %v3532_v46 = vadd.f32 %v2392_v57, %v975_v54  ;;  %v2757_v42 = vmov 0   ;;  %v1074_v57 = vpack.c.bf16 %v1070_v16, %v1068_v6  ;;  %1096 = vmatpush1.bf16.msra.mxu0 %v3601_v37 }
 0x2e4   :  { %v2517_v39 = vpop.f32.mrf.mxu1  ;;  %1225 = vmatprep.mubr.bf16.mxu1 %v2757_v42  ;;  %v1058_v54 = vunpack.c.h.bf16 %v3592_v14  ;;  %v1073_v52 = vpack.c.bf16 %v1069_v38, %v1067_v2  ;;  %v1055_v33 = vunpack.c.l.bf16 %v3601_v37  ;;  %1113 = vmatprep.mubr.bf16.mxu0 %v2757_v42 }
 0x2e5   :  { %v976_v40 = vadd.f32 %v2516_v59, %v915_v50  ;;  %v1007_v26 = vsel %vm91_vm0, %v3532_v46, -inf  ;;  %v1057_v50 = vunpack.c.h.bf16 %v3601_v37  ;;  %1205 = vmatprep.subr.bf16.mxu1 %v1074_v57  ;;  %v1064_v59 = vsub.f32 %v1032_v24, %v1056_v51  ;;  %1152 = vmatprep.subr.bf16.mxu0 %v1044_v21 }
 0x2e6   :  { %v2518_v18 = vpop.f32.mrf.mxu1  ;;  %1008 = vmax.xlane.f32.xlu0 %v1007_v26  ;;  %1206 = vmatpush1.bf16.msra.mxu1 %v1073_v52  ;;  %v1273_v26 = vrot.slane %v2885_v55, 1 }
 0x2e7   :  { %v2519_v47 = vadd.f32 %v2518_v18, %v2517_v39  ;;  %v3539_v62 = vadd.f32 %v2393_v53, %v976_v40  ;;  %v1066_v39 = vsub.f32 %v1034_v9, %v1058_v54  ;;  %v1063_v53 = vsub.f32 %v1031_v13, %v1055_v33 }
 0x2e8   :  { %v2520_v63 = vpop.f32.mrf.mxu1  ;;  %v1065_v3 = vsub.f32 %v1033_v31, %v1057_v50  ;;  %v1313_v18 = vrot.slane %v2885_v55, 4 }
 0x2e9   :  { %v977_v34 = vadd.f32 %v2519_v47, %v920_v44  ;;  %v1010_v28 = vsel %vm91_vm0, %v3539_v62, -inf  ;;  %v1072_v40 = vpack.c.bf16 %v1066_v39, %v1064_v59  ;;  %v1272_v44 = vrot.slane %v2913_v10, 1 }
 0x2ea   :  { %v2521_v48 = vpop.f32.mrf.mxu1  ;;  %1011 = vmax.xlane.f32.xlu1 %v1010_v28  ;;  %v1071_v35 = vpack.c.bf16 %v1065_v3, %v1063_v53  ;;  %v1312_v47 = vrot.slane %v2913_v10, 4  ;;  %v1297_v28 = vrot.slane %v2885_v55, 3 }
 0x2eb   :  { %v2522_v0 = vadd.f32 %v2521_v48, %v2520_v63  ;;  %v3546_v61 = vadd.f32 %v2394_v58, %v977_v34  ;;  %1207 = vmatprep.subr.bf16.mxu1 %v1072_v40  ;;  %v1295_v63 = vrot.slane %v2892_v60, 3  ;;  %v1328_v58 = vrot.slane %v2913_v10, 5 }
 0x2ec   :  { %1208 = vmatpush1.bf16.msra.mxu1 %v1071_v35  ;;  %v1294_v34 = vrot.slane %v3968_v30, 3  ;;  %v1350_v48 = vrot.slane %v3968_v30, 7 }
 0x2ed   :  { %v978_v45 = vadd.f32 %v2522_v0, %v923_v4  ;;  %v1013_v8 = vsel %vm91_vm0, %v3546_v61, -inf  ;;  %v1353_v4 = vrot.slane %v2885_v55, 7  ;;  %v1296_v0 = vrot.slane %v2913_v10, 3 }
 0x2ee   :  { %1014 = vmax.xlane.f32.xlu0 %v1013_v8 }
 0x2ef   :  { %v3553_v5 = vadd.f32 %v2395_v22, %v978_v45  ;;  %v1352_v22 = vrot.slane %v2913_v10, 7 }
 0x2f1   :  { %v1016_v15 = vsel %vm91_vm0, %v3553_v5, -inf }
 0x2f2   :  { %1017 = vmax.xlane.f32.xlu0 %v1016_v15 }
 0x2fb   :  { %1258 = vrot.lane.b32.xlu1 %v3968_v30, %s2756_s2 }
 0x2ff   :  { %1274 = vrot.lane.b32.xlu1 %v1270_v56, %s2754_s24 }
 0x303   :  { %1276 = vrot.lane.b32.xlu1 %v1271_v20, %s2754_s24 }
 0x307   :  { %1316 = vrot.lane.b32.xlu1 %v1311_v12, %s2756_s2 }
 0x308   :  { %1260 = vrot.lane.b32.xlu0 %v2892_v60, %s2756_s2 }
 0x30b   :  { %1332 = vrot.lane.b32.xlu1 %v1327_v41, %s2754_s24 }
 0x30c   :  { %1314 = vrot.lane.b32.xlu0 %v1310_v19, %s2756_s2 }
 0x30f   :  { %1264 = vrot.lane.b32.xlu1 %v2885_v55, %s2756_s2 }
 0x310   :  { %1330 = vrot.lane.b32.xlu0 %v1326_v7, %s2754_s24 }
 0x313   :  { %1280 = vrot.lane.b32.xlu1 %v1273_v26, %s2754_s24 }
 0x314   :  { %1262 = vrot.lane.b32.xlu0 %v2913_v10, %s2756_s2 }
 0x317   :  { %1320 = vrot.lane.b32.xlu1 %v1313_v18, %s2756_s2 }
 0x318   :  { %1278 = vrot.lane.b32.xlu0 %v1272_v44, %s2754_s24 }
 0x31b   :  { %1336 = vrot.lane.b32.xlu1 %v1329_v49, %s2754_s24 }
 0x31c   :  { %1318 = vrot.lane.b32.xlu0 %v1312_v47, %s2756_s2 }
 0x31f   :  { %1300 = vrot.lane.b32.xlu1 %v1295_v63, %s2755_s20 }
 0x320   :  { %1334 = vrot.lane.b32.xlu0 %v1328_v58, %s2754_s24 }
 0x323   :  { %1356 = vrot.lane.b32.xlu1 %v1351_v36, %s2755_s20 }
 0x324   :  { %1298 = vrot.lane.b32.xlu0 %v1294_v34, %s2755_s20 }
 0x327   :  { %1304 = vrot.lane.b32.xlu1 %v1297_v28, %s2755_s20 }
 0x328   :  { %1354 = vrot.lane.b32.xlu0 %v1350_v48, %s2755_s20 }
 0x32b   :  { %1360 = vrot.lane.b32.xlu1 %v1353_v4, %s2755_s20 }
 0x32c   :  { %1302 = vrot.lane.b32.xlu0 %v1296_v0, %s2755_s20 }
 0x330   :  { %1358 = vrot.lane.b32.xlu0 %v1352_v22, %s2755_s20 }
 0x36f   :  { %v1009_v45 = vpop.xlane.xlu0 %1008 }
 0x370   :  { %v1019_v8 = vsub.f32 %v3532_v46, %v1009_v45 }
 0x372   :  { %v1023_v15 = vmul.f32 1.442695, %v1019_v8 }
 0x373   :  { %v1012_v56 = vpop.xlane.xlu1 %1011 }
 0x374   :  { %v1020_v20 = vsub.f32 %v3539_v62, %v1012_v56  ;;  %2680 = vpow2.f32 %v1023_v15 }
 0x376   :  { %v1025_v12 = vmul.f32 1.442695, %v1020_v20  ;;  %v1287_v20 = vrot.slane %v2892_v60, 2 }
 0x377   :  { %v1015_v23 = vpop.xlane.xlu0 %1014 }
 0x378   :  { %2682 = vpow2.f32 %v1025_v12  ;;  %v1021_v1 = vsub.f32 %v3546_v61, %v1015_v23 }
 0x37a   :  { %v1027_v21 = vmul.f32 1.442695, %v1021_v1 }
 0x37b   :  { %v1018_v25 = vpop.xlane.xlu0 %1017 }
 0x37c   :  { %v1022_v27 = vsub.f32 %v3553_v5, %v1018_v25  ;;  %2684 = vpow2.f32 %v1027_v21 }
 0x37e   :  { %v1029_v11 = vmul.f32 1.442695, %v1022_v27 }
 0x37f   :  { %v1261_v57 = vpop.permute.xlu0 %1260 }
 0x380   :  { %2686 = vpow2.f32 %v1029_v11 }
 0x381   :  { %v2681_v43 = vpop.eup %2680 }
 0x385   :  { %v2683_v41 = vpop.eup %2682 }
 0x386   :  { %v1039_v46 = vpack.c.bf16 %v2683_v41, %v2681_v43 }
 0x388   :  { %v1046_v19 = vunpack.c.h.bf16 %v1039_v46  ;;  %2400 = vmatmul.mubr.msk.bf16.vlgmr.msra.gmra.mxu1 %vm91_vm0, %v1039_v46  ;;  %v1045_v62 = vunpack.c.l.bf16 %v1039_v46 }
 0x389   :  { %1235 = vmatprep.mubr.bf16.mxu1 %v2757_v42  ;;  %v2685_v24 = vpop.eup %2684 }
 0x38a   :  { %v1050_v17 = vsub.f32 %v2683_v41, %v1046_v19  ;;  %v1049_v32 = vsub.f32 %v2681_v43, %v1045_v62  ;;  %v1286_v41 = vrot.slane %v3968_v30, 2  ;;  %v1342_v19 = vrot.slane %v3968_v30, 6 }
 0x38c   :  { %v1053_v61 = vpack.c.bf16 %v1050_v17, %v1049_v32 }
 0x38d   :  { %v2687_v9 = vpop.eup %2686 }
 0x38e   :  { %2396 = vmatmul.mubr.msk.bf16.vlgmr.msra.gmra.mxu0 %vm91_vm0, %v1053_v61  ;;  %v1040_v5 = vpack.c.bf16 %v2687_v9, %v2685_v24 }
 0x38f   :  { %1153 = vmatpush1.bf16.msra.mxu0 %v3577_v29  ;;  %1123 = vmatprep.mubr.bf16.mxu0 %v2757_v42  ;;  %v1259_v29 = vpop.permute.xlu1 %1258 }
 0x390   :  { %2401 = vmatmul.mubr.msk.bf16.gmra.mxu1 %vm91_vm0, %v1040_v5  ;;  %v1047_v6 = vunpack.c.l.bf16 %v1040_v5  ;;  %v1048_v16 = vunpack.c.h.bf16 %v1040_v5  ;;  %1154 = vmatprep.subr.bf16.mxu0 %v3592_v14  ;;  %v1315_v14 = vpop.permute.xlu0 %1314 }
 0x392   :  { %v1051_v13 = vsub.f32 %v2685_v24, %v1047_v6  ;;  %v1052_v31 = vsub.f32 %v2687_v9, %v1048_v16  ;;  %v1345_v6 = vrot.slane %v2885_v55, 6  ;;  %v1344_v16 = vrot.slane %v2913_v10, 6 }
 0x393   :  { %1155 = vmatpush1.bf16.msra.mxu0 %v3601_v37  ;;  %v1275_v38 = vpop.permute.xlu1 %1274 }
 0x394   :  { %v1054_v2 = vpack.c.bf16 %v1052_v31, %v1051_v13  ;;  %v1331_v52 = vpop.permute.xlu0 %1330  ;;  %v1366_v43 = vsel %vm91_vm0, %v1259_v29, %v1275_v38 }
 0x395   :  { %v1378_v1 = vsel %vm91_vm0, %v1315_v14, %v1331_v52 }
 0x396   :  { %2397 = vmatmul.mubr.msk.bf16.gmra.mxu0 %vm91_vm0, %v1054_v2  ;;  %v1382_v9 = vsel %vm654_vm1, %v1378_v1, %v1342_v19 }
 0x397   :  { %1172 = vmatprep.mubr.bf16.mxu0 %v2757_v42  ;;  %v1277_v51 = vpop.permute.xlu1 %1276 }
 0x398   :  { %v3663_v37 = vpop.permute.xlu0 %1262  ;;  %v1367_v17 = vsel %vm91_vm0, %v1261_v57, %v1277_v51  ;;  %v1370_v51 = vsel %vm654_vm1, %v1366_v43, %v1286_v41 }
 0x399   :  { %v1371_v57 = vsel %vm654_vm1, %v1367_v17, %v1287_v20 }
 0x39b   :  { %v1317_v54 = vpop.permute.xlu1 %1316 }
 0x39c   :  { %v1279_v7 = vpop.permute.xlu0 %1278 }
 0x39d   :  { %v1368_v52 = vsel %vm91_vm0, %v3663_v37, %v1279_v7 }
 0x39e   :  { %2398 = vmatmul.mubr.msk.bf16.vlgmr.msra.gmra.mxu0 %vm91_vm0, %v1039_v46  ;;  %v1343_v46 = vrot.slane %v2892_v60, 6 }
 0x39f   :  { %1182 = vmatprep.mubr.bf16.mxu0 %v2757_v42  ;;  %v1333_v33 = vpop.permute.xlu1 %1332 }
 0x3a0   :  { %v1319_v39 = vpop.permute.xlu0 %1318  ;;  %v1379_v32 = vsel %vm91_vm0, %v1317_v54, %v1333_v33 }
 0x3a1   :  { %v1383_v14 = vsel %vm654_vm1, %v1379_v32, %v1343_v46 }
 0x3a3   :  { %v3665_v50 = vpop.permute.xlu1 %1264 }
 0x3a4   :  { %v1335_v40 = vpop.permute.xlu0 %1334 }
 0x3a5   :  { %v1380_v30 = vsel %vm91_vm0, %v1319_v39, %v1335_v40 }
 0x3a6   :  { %2399 = vmatmul.mubr.msk.bf16.gmra.mxu0 %vm91_vm0, %v1040_v5  ;;  %v1288_v5 = vrot.slane %v2913_v10, 2 }
 0x3a7   :  { %v3667_v59 = vpop.permute.xlu1 %1280 }
 0x3a8   :  { %v1299_v63 = vpop.permute.xlu0 %1298  ;;  %v1369_v40 = vsel %vm91_vm0, %v3665_v50, %v3667_v59  ;;  %v1372_v59 = vsel %vm654_vm1, %v1368_v52, %v1288_v5 }
 0x3a9   :  { %v1374_v33 = vsel %vm659_vm2, %v1370_v51, %v1299_v63 }
 0x3ab   :  { %v3669_v42 = vpop.permute.xlu1 %1320 }
 0x3ac   :  { %v1355_v4 = vpop.permute.xlu0 %1354 }
 0x3ad   :  { %v1386_v54 = vsel %vm659_vm2, %v1382_v9, %v1355_v4 }
 0x3af   :  { %v1337_v44 = vpop.permute.xlu1 %1336 }
 0x3b0   :  { %v1303_v21 = vpop.permute.xlu0 %1302 }
 0x3b3   :  { %v1301_v28 = vpop.permute.xlu1 %1300 }
 0x3b4   :  { %v1359_v39 = vpop.permute.xlu0 %1358 }
 0x3b7   :  { %v1357_v15 = vpop.permute.xlu1 %1356 }
 0x3bb   :  { %v1305_v31 = vpop.permute.xlu1 %1304 }
 0x448   :  { %v1227_v26 = vpop.f32.mrf.mxu1 }
 0x44a   :  { %v1229_v49 = vpop.f32.mrf.mxu1 }
 0x44c   :  { %v1231_v36 = vpop.f32.mrf.mxu1 }
 0x44e   :  { %v1115_v53 = vpop.f32.mrf.mxu0  ;;  %v1233_v0 = vpop.f32.mrf.mxu1 }
 0x450   :  { %v1117_v3 = vpop.f32.mrf.mxu0  ;;  %v1237_v12 = vpop.f32.mrf.mxu1 }
 0x452   :  { %v1119_v35 = vpop.f32.mrf.mxu0  ;;  %v1239_v13 = vpop.f32.mrf.mxu1 }
 0x454   :  { %v1121_v18 = vpop.f32.mrf.mxu0 }
 0x456   :  { %v1125_v47 = vpop.f32.mrf.mxu0 }
 0x458   :  { %v1127_v58 = vpop.f32.mrf.mxu0 }
 0x45a   :  { %v1129_v34 = vpop.f32.mrf.mxu0 }
 0x45c   :  { %v3671_v48 = vpop.f32.mrf.mxu0 }
 0x45e   :  { %v1174_v22 = vpop.f32.mrf.mxu0 }
 0x45f   :  { %v1175_v45 = vadd.f32 %v1174_v22, %v1115_v53  ;;  %v1361_v22 = vpop.permute.xlu1 %1360 }
 0x460   :  { %v1176_v8 = vpop.f32.mrf.mxu0 }
 0x461   :  { %v1177_v56 = vadd.f32 %v1176_v8, %v1117_v3  ;;  %v1246_v25 = vadd.f32 %v1227_v26, %v1175_v45  ;;  %v1381_v26 = vsel %vm91_vm0, %v3669_v42, %v1337_v44 }
 0x462   :  { %v1178_v23 = vpop.f32.mrf.mxu0 }
 0x463   :  { %v1247_v27 = vadd.f32 %v1229_v49, %v1177_v56  ;;  %v1179_v11 = vadd.f32 %v1178_v23, %v1119_v35  ;;  %v1387_v35 = vsel %vm659_vm2, %v1383_v14, %v1357_v15  ;;  %v1241_v49 = vpop.f32.mrf.mxu1  ;;  %v1289_v56 = vrot.slane %v2885_v55, 2 }
 0x464   :  { %v1180_v62 = vpop.f32.mrf.mxu0 }
 0x465   :  { %v1181_v24 = vadd.f32 %v1180_v62, %v1121_v18  ;;  %v3681_v61 = vadd.f32 %v1247_v27, %v1246_v25  ;;  %v1248_v2 = vadd.f32 %v1231_v36, %v1179_v11  ;;  %v1384_v18 = vsel %vm654_vm1, %v1380_v30, %v1344_v16  ;;  %v3984_v36 = vld [vmem:[#allocation6_spill] sm:$0xff]  ;;  %v1243_v20 = vpop.f32.mrf.mxu1 }
 0x466   :  { %v1184_v60 = vpop.f32.mrf.mxu0  ;;  %v1397_v37 = vrot.slane %v1386_v54, %v3984_v36  ;;  %v1393_v50 = vrot.slane %v1374_v33, %v3984_v36  ;;  %v1388_v42 = vsel %vm659_vm2, %v1384_v18, %v1359_v39 }
 0x467   :  { %v1249_v29 = vadd.f32 %v1233_v0, %v1181_v24  ;;  %v1185_v38 = vadd.f32 %v1184_v60, %v1125_v47  ;;  %1482 = vrot.lane.b32.xlu0 %v3681_v61, %s2756_s2  ;;  %v1376_v0 = vsel %vm659_vm2, %v1372_v59, %v1303_v21 }
 0x468   :  { %v1186_v10 = vpop.f32.mrf.mxu0  ;;  %v1423_v45 = vmul.f32 %v1397_v37, %v1247_v27  ;;  %v1422_v23 = vmul.f32 %v1393_v50, %v1246_v25  ;;  %v1373_v27 = vsel %vm654_vm1, %v1369_v40, %v1289_v56  ;;  %v1529_v40 = vld [vmem:[%s3942_s6 + $0x18] sm:$0xff] }
 0x469   :  { %v1187_v53 = vadd.f32 %v1186_v10, %v1127_v58  ;;  %v1475_v3 = vadd.f32 %v1249_v29, %v1248_v2  ;;  %v1250_v7 = vadd.f32 %v1237_v12, %v1185_v38  ;;  %v1375_v58 = vsel %vm659_vm2, %v1371_v57, %v1301_v28 }
 0x46a   :  { %v1188_v47 = vpop.f32.mrf.mxu0  ;;  %v1385_v28 = vsel %vm654_vm1, %v1381_v26, %v1345_v6  ;;  %v1413_v12 = vrot.slane %v1388_v42, %v3984_v36  ;;  %v1401_v21 = vrot.slane %v1375_v58, %v3984_v36  ;;  %v1430_v19 = vadd.f32 %v1423_v45, %v1422_v23 }
 0x46b   :  { %v1251_v63 = vadd.f32 %v1239_v13, %v1187_v53  ;;  %v1189_v4 = vadd.f32 %v1188_v47, %v1129_v34  ;;  %1484 = vrot.lane.b32.xlu1 %v1475_v3, %s2756_s2  ;;  %v1405_v34 = vrot.slane %v1387_v35, %v3984_v36  ;;  %v1389_v43 = vsel %vm659_vm2, %v1385_v28, %v1361_v22  ;;  %v1527_v47 = vld [vmem:[%s3942_s6 + $0x8] sm:$0xff] }
 0x46c   :  { %v1190_v44 = vpop.f32.mrf.mxu0  ;;  %v1377_v62 = vsel %vm659_vm2, %v1373_v27, %v1305_v31  ;;  %v1421_v25 = vrot.slane %v1389_v43, %v3984_v36  ;;  %v1424_v17 = vmul.f32 %v1401_v21, %v1248_v2 }
 0x46d   :  { %v1191_v8 = vadd.f32 %v1190_v44, %v3671_v48  ;;  %v1476_v15 = vadd.f32 %v1251_v63, %v1250_v7  ;;  %v1252_v1 = vadd.f32 %v1241_v49, %v1189_v4  ;;  %v1409_v48 = vrot.slane %v1376_v0, %v3984_v36  ;;  %v1526_v49 = vld [vmem:[%s3942_s6] sm:$0xff] }
 0x46e   :  { %v1425_v41 = vmul.f32 %v1405_v34, %v1249_v29  ;;  %v1427_v55 = vmul.f32 %v1413_v12, %v1251_v63  ;;  %v1417_v24 = vrot.slane %v1377_v62, %v3984_v36 }
 0x46f   :  { %v1253_v11 = vadd.f32 %v1243_v20, %v1191_v8  ;;  %1486 = vrot.lane.b32.xlu0 %v1476_v15, %s2756_s2  ;;  %v1426_v32 = vmul.f32 %v1409_v48, %v1250_v7  ;;  %v1532_v7 = vpack.c.bf16 %v1527_v47, %v1526_v49 }
 0x470   :  { %v1431_v5 = vadd.f32 %v1425_v41, %v1424_v17  ;;  %v1428_v16 = vmul.f32 %v1417_v24, %v1252_v1 }
 0x471   :  { %v1477_v46 = vadd.f32 %v1253_v11, %v1252_v1  ;;  %v1429_v9 = vmul.f32 %v1421_v25, %v1253_v11  ;;  %v1432_v6 = vadd.f32 %v1427_v55, %v1426_v32  ;;  %v1544_v4 = vunpack.c.l.bf16 %v1532_v7 }
 0x472   :  { %v1545_v58 = vunpack.c.h.bf16 %v1532_v7 }
 0x473   :  { %1488 = vrot.lane.b32.xlu1 %v1477_v46, %s2756_s2  ;;  %1438 = vrot.lane.b32.xlu0 %v1430_v19, %s2756_s2  ;;  %v1433_v13 = vadd.f32 %v1429_v9, %v1428_v16  ;;  %v1548_v50 = vsub.f32 %v1526_v49, %v1544_v4 }
 0x474   :  { %v1549_v59 = vsub.f32 %v1527_v47, %v1545_v58 }
 0x476   :  { %v1552_v42 = vpack.c.bf16 %v1549_v59, %v1548_v50 }
 0x477   :  { %1440 = vrot.lane.b32.xlu1 %v1431_v5, %s2756_s2  ;;  %1442 = vrot.lane.b32.xlu0 %v1432_v6, %s2756_s2 }
 0x47b   :  { %1444 = vrot.lane.b32.xlu1 %v1433_v13, %s2756_s2 }
 0x4d9   :  { %v1483_v60 = vpop.permute.xlu0 %1482 }
 0x4da   :  { %v1494_v30 = vadd.f32 %v1483_v60, %v3681_v61 }
 0x4dc   :  { %1502 = vrot.lane.b32.xlu0 %v1494_v30, %s2754_s24 }
 0x4dd   :  { %v1485_v31 = vpop.permute.xlu1 %1484 }
 0x4de   :  { %v1495_v2 = vadd.f32 %v1485_v31, %v1475_v3  ;;  %v1528_v3 = vld [vmem:[%s3942_s6 + $0x10] sm:$0xff] }
 0x4df   :  { %v3743_v26 = vpack.c.bf16 %v1529_v40, %v1528_v3 }
 0x4e0   :  { %1504 = vrot.lane.b32.xlu1 %v1495_v2, %s2754_s24 }
 0x4e1   :  { %v1487_v29 = vpop.permute.xlu0 %1486  ;;  %2589 = vmatprep.subr.bf16.mxu0 %v3743_v26  ;;  %v1546_v35 = vunpack.c.l.bf16 %v3743_v26  ;;  %v1547_v18 = vunpack.c.h.bf16 %v3743_v26 }
 0x4e2   :  { %v1496_v38 = vadd.f32 %v1487_v29, %v1476_v15  ;;  %2590 = vmatpush3.bf16.msra.mxu0 %v3743_v26 }
 0x4e3   :  { %v1550_v36 = vsub.f32 %v1528_v3, %v1546_v35  ;;  %v1551_v37 = vsub.f32 %v1529_v40, %v1547_v18  ;;  %2591 = vmatprep.subr.bf16.mxu0 %v1532_v7  ;;  %v2408_v18 = vld [vmem:[%s3943_s7] ss:$0 sm:$0xff] }
 0x4e4   :  { %1506 = vrot.lane.b32.xlu0 %v1496_v38, %s2754_s24 }
 0x4e5   :  { %v1489_v57 = vpop.permute.xlu1 %1488  ;;  %v1439_v51 = vpop.permute.xlu0 %1438  ;;  %v1553_v63 = vpack.c.bf16 %v1551_v37, %v1550_v36 }
 0x4e6   :  { %v1497_v14 = vadd.f32 %v1489_v57, %v1477_v46  ;;  %v1450_v54 = vadd.f32 %v1439_v51, %v1430_v19  ;;  %2592 = vmatpush3.bf16.msra.mxu0 %v1532_v7 }
 0x4e7   :  { %2605 = vmatprep.subr.bf16.mxu1 %v1553_v63  ;;  %2597 = vmatprep.subr.bf16.mxu0 %v3743_v26 }
 0x4e8   :  { %1508 = vrot.lane.b32.xlu1 %v1497_v14, %s2754_s24  ;;  %1458 = vrot.lane.b32.xlu0 %v1450_v54, %s2754_s24 }
 0x4e9   :  { %v1441_v10 = vpop.permute.xlu1 %1440  ;;  %v1443_v61 = vpop.permute.xlu0 %1442  ;;  %2606 = vmatpush3.bf16.msra.mxu1 %v1553_v63 }
 0x4ea   :  { %v1451_v52 = vadd.f32 %v1441_v10, %v1431_v5  ;;  %v1452_v33 = vadd.f32 %v1443_v61, %v1432_v6  ;;  %2607 = vmatprep.subr.bf16.mxu1 %v1552_v42 }
 0x4ec   :  { %1460 = vrot.lane.b32.xlu1 %v1451_v52, %s2754_s24  ;;  %1462 = vrot.lane.b32.xlu0 %v1452_v33, %s2754_s24 }
 0x4ed   :  { %v1445_v39 = vpop.permute.xlu1 %1444  ;;  %2608 = vmatpush3.bf16.msra.mxu1 %v1552_v42 }
 0x4ee   :  { %v1453_v53 = vadd.f32 %v1445_v39, %v1433_v13 }
 0x4f0   :  { %1464 = vrot.lane.b32.xlu1 %v1453_v53, %s2754_s24 }
 0x54e   :  { %v1503_v44 = vpop.permute.xlu0 %1502 }
 0x54f   :  { %v1514_v0 = vadd.f32 %v1503_v44, %v1494_v30 }
 0x551   :  { %2688 = vrcp.f32 %v1514_v0 }
 0x552   :  { %v1505_v22 = vpop.permute.xlu1 %1504 }
 0x553   :  { %v1515_v45 = vadd.f32 %v1505_v22, %v1495_v2 }
 0x555   :  { %2690 = vrcp.f32 %v1515_v45 }
 0x556   :  { %v1507_v8 = vpop.permute.xlu0 %1506 }
 0x557   :  { %v1516_v15 = vadd.f32 %v1507_v8, %v1496_v38 }
 0x559   :  { %2692 = vrcp.f32 %v1516_v15 }
 0x55a   :  { %v1509_v34 = vpop.permute.xlu1 %1508  ;;  %v1459_v28 = vpop.permute.xlu0 %1458 }
 0x55b   :  { %v1517_v56 = vadd.f32 %v1509_v34, %v1497_v14  ;;  %v1470_v23 = vadd.f32 %v1459_v28, %v1450_v54 }
 0x55d   :  { %2694 = vrcp.f32 %v1517_v56 }
 0x55e   :  { %v1461_v20 = vpop.permute.xlu1 %1460  ;;  %v2689_v12 = vpop.eup %2688 }
 0x55f   :  { %v1471_v1 = vadd.f32 %v1461_v20, %v1451_v52  ;;  %v1519_v21 = vmul.f32 %v2689_v12, %v1470_v23  ;;  %v1463_v43 = vpop.permute.xlu0 %1462 }
 0x560   :  { %v1472_v17 = vadd.f32 %v1463_v43, %v1452_v33 }
 0x562   :  { %v2691_v11 = vpop.eup %2690  ;;  %v1465_v41 = vpop.permute.xlu1 %1464 }
 0x563   :  { %v1521_v27 = vmul.f32 %v2691_v11, %v1471_v1  ;;  %v1473_v32 = vadd.f32 %v1465_v41, %v1453_v53 }
 0x565   :  { %v1530_v48 = vpack.c.bf16 %v1521_v27, %v1519_v21 }
 0x566   :  { %v2693_v19 = vpop.eup %2692 }
 0x567   :  { %v1534_v55 = vunpack.c.l.bf16 %v1530_v48  ;;  %v1535_v46 = vunpack.c.h.bf16 %v1530_v48  ;;  %2609 = vmatprep.mubr.msk.bf16.mxu1 %vm91_vm0, %v1530_v48  ;;  %v1523_v5 = vmul.f32 %v2693_v19, %v1472_v17  ;;  %v1837_v19 = vld [vmem:[%s3946_s10 + $0x10] sm:$0xff] }
 0x569   :  { %v1538_v62 = vsub.f32 %v1519_v21, %v1534_v55  ;;  %v1539_v25 = vsub.f32 %v1521_v27, %v1535_v46 }
 0x56a   :  { %v2695_v24 = vpop.eup %2694 }
 0x56b   :  { %v1542_v9 = vpack.c.bf16 %v1539_v25, %v1538_v62  ;;  %v1525_v6 = vmul.f32 %v2695_v24, %v1473_v32  ;;  %v1838_v62 = vld [vmem:[%s3946_s10 + $0x18] sm:$0xff]  ;;  %v1835_v25 = vld [vmem:[%s3946_s10] sm:$0xff]  ;;  %v1836_v32 = vld [vmem:[%s3946_s10 + $0x8] sm:$0xff] }
 0x56c   :  { %v1842_v17 = vpack.c.bf16 %v1838_v62, %v1837_v19  ;;  %v1841_v24 = vpack.c.bf16 %v1836_v32, %v1835_v25 }
 0x56d   :  { %v1531_v16 = vpack.c.bf16 %v1525_v6, %v1523_v5  ;;  %2593 = vmatprep.mubr.msk.bf16.mxu0 %vm91_vm0, %v1542_v9 }
 0x56e   :  { %2621 = vmatprep.subr.bf16.mxu1 %v1842_v17  ;;  %v1855_v9 = vunpack.c.l.bf16 %v1842_v17 }
 0x56f   :  { %v1536_v13 = vunpack.c.l.bf16 %v1531_v16  ;;  %v1537_v60 = vunpack.c.h.bf16 %v1531_v16  ;;  %2610 = vmatmul.mubr.msk.bf16.vlgmr.msra.gmra.mxu1 %vm91_vm0, %v1531_v16 }
 0x570   :  { %2622 = vmatpush3.bf16.msra.mxu1 %v1842_v17 }
 0x571   :  { %v1540_v30 = vsub.f32 %v1523_v5, %v1536_v13  ;;  %v1541_v31 = vsub.f32 %v1525_v6, %v1537_v60  ;;  %2623 = vmatprep.subr.bf16.mxu1 %v1841_v24  ;;  %v1856_v5 = vunpack.c.h.bf16 %v1842_v17  ;;  %v1853_v6 = vunpack.c.l.bf16 %v1841_v24 }
 0x572   :  { %v1859_v13 = vsub.f32 %v1837_v19, %v1855_v9 }
 0x573   :  { %v1543_v2 = vpack.c.bf16 %v1541_v31, %v1540_v30  ;;  %v1860_v60 = vsub.f32 %v1838_v62, %v1856_v5  ;;  %v1857_v30 = vsub.f32 %v1835_v25, %v1853_v6 }
 0x574   :  { %2624 = vmatpush3.bf16.msra.mxu1 %v1841_v24 }
 0x575   :  { %2594 = vmatmul.mubr.msk.bf16.vlgmr.msra.gmra.mxu0 %vm91_vm0, %v1543_v2  ;;  %v3803_v2 = vpack.c.bf16 %v1860_v60, %v1859_v13 }
 0x576   :  { %2598 = vmatpush3.bf16.msra.mxu0 %v3743_v26  ;;  %2601 = vmatprep.mubr.msk.bf16.mxu0 %vm91_vm0, %v1530_v48 }
 0x577   :  { %2599 = vmatprep.subr.bf16.mxu0 %v1532_v7 }
 0x57a   :  { %2600 = vmatpush3.bf16.msra.mxu0 %v1532_v7 }
 0x57b   :  { %2613 = vmatprep.subr.bf16.mxu0 %v1842_v17 }
 0x57d   :  { %2602 = vmatmul.mubr.msk.bf16.vlgmr.msra.gmra.mxu0 %vm91_vm0, %v1531_v16  ;;  %v1854_v16 = vunpack.c.h.bf16 %v1841_v24 }
 0x57e   :  { %2614 = vmatpush3.bf16.msra.mxu0 %v1842_v17 }
 0x57f   :  { %2615 = vmatprep.subr.bf16.mxu0 %v1841_v24  ;;  %v1858_v31 = vsub.f32 %v1836_v32, %v1854_v16  ;;  %v2728_v32 = vld [vmem:[%s3961_s0] sm:$0xff]  ;;  %v2731_v16 = vld [vmem:[%s3961_s0 + $0x18] sm:$0xff] }
 0x582   :  { %2616 = vmatpush3.bf16.msra.mxu0 %v1841_v24 }
 0x583   :  { %2629 = vmatprep.subr.bf16.mxu0 %v3803_v2 }
 0x62f   :  { %v2611_v57 = vpop.f32.mrf.mxu1 }
 0x631   :  { %v1698_v54 = vpop.f32.mrf.mxu1 }
 0x633   :  { %v2612_v39 = vpop.f32.mrf.mxu1 }
 0x635   :  { %v2595_v29 = vpop.f32.mrf.mxu0  ;;  %v1701_v36 = vpop.f32.mrf.mxu1 }
 0x637   :  { %v1594_v38 = vpop.f32.mrf.mxu0 }
 0x639   :  { %v2596_v51 = vpop.f32.mrf.mxu0 }
 0x63b   :  { %v1597_v14 = vpop.f32.mrf.mxu0 }
 0x63d   :  { %v2603_v10 = vpop.f32.mrf.mxu0 }
 0x63e   :  { %v1658_v61 = vadd.f32 %v2603_v10, %v2595_v29  ;;  %v3805_v29 = vpack.c.bf16 %v1858_v31, %v1857_v30 }
 0x63f   :  { %v1649_v52 = vpop.f32.mrf.mxu0 }
 0x640   :  { %v1650_v33 = vadd.f32 %v1649_v52, %v1594_v38  ;;  %v1715_v3 = vadd.f32 %v2611_v57, %v1658_v61 }
 0x641   :  { %v2604_v53 = vpop.f32.mrf.mxu0 }
 0x642   :  { %v1713_v40 = vadd.f32 %v1698_v54, %v1650_v33  ;;  %v1661_v26 = vadd.f32 %v2604_v53, %v2596_v51  ;;  %v1726_v4 = vadd.f32 %v2408_v18, %v1715_v3 }
 0x643   :  { %v1652_v35 = vpop.f32.mrf.mxu0 }
 0x644   :  { %v1653_v49 = vadd.f32 %v1652_v35, %v1597_v14  ;;  %v1724_v47 = vadd.f32 %v2408_v18, %v1713_v40  ;;  %v1716_v37 = vadd.f32 %v2612_v39, %v1661_v26  ;;  %v1736_v59 = vsel %vm91_vm0, %v1726_v4, 0.0 }
 0x646   :  { %v1714_v7 = vadd.f32 %v1701_v36, %v1653_v49  ;;  %v1730_v63 = vsel %vm91_vm0, %v1724_v47, 0.0  ;;  %v1727_v42 = vadd.f32 %v2408_v18, %v1716_v37 }
 0x647   :  { %1731 = vadd.xlane.f32.xlu0 %v1730_v63 }
 0x648   :  { %v1725_v58 = vadd.f32 %v2408_v18, %v1714_v7  ;;  %v1739_v44 = vsel %vm91_vm0, %v1727_v42, 0.0 }
 0x64a   :  { %v1733_v50 = vsel %vm91_vm0, %v1725_v58, 0.0 }
 0x64b   :  { %1734 = vadd.xlane.f32.xlu1 %v1733_v50  ;;  %1737 = vadd.xlane.f32.xlu0 %v1736_v59 }
 0x64f   :  { %1740 = vadd.xlane.f32.xlu0 %v1739_v44 }
 0x6d0   :  { %v1732_v0 = vpop.xlane.xlu0 %1731 }
 0x6d1   :  { %v1743_v22 = vmul.f32 0.03125, %v1732_v0 }
 0x6d3   :  { %v3771_v45 = vsub.f32 %v1724_v47, %v1743_v22 }
 0x6d4   :  { %v1735_v8 = vpop.xlane.xlu1 %1734  ;;  %v1738_v15 = vpop.xlane.xlu0 %1737 }
 0x6d5   :  { %v1744_v34 = vmul.f32 0.03125, %v1735_v8  ;;  %v1745_v56 = vmul.f32 0.03125, %v1738_v15  ;;  %v1751_v28 = vmul.f32 %v3771_v45, %v3771_v45 }
 0x6d7   :  { %v3775_v20 = vsub.f32 %v1725_v58, %v1744_v34  ;;  %v3777_v12 = vsub.f32 %v1726_v4, %v1745_v56  ;;  %v1755_v23 = vsel %vm91_vm0, %v1751_v28, 0.0  ;;  %v2409_v56 = vld [vmem:[%s3944_s8] ss:$0 sm:$0xff] }
 0x6d8   :  { %1756 = vadd.xlane.f32.xlu1 %v1755_v23  ;;  %v1741_v1 = vpop.xlane.xlu0 %1740 }
 0x6d9   :  { %v1746_v11 = vmul.f32 0.03125, %v1741_v1  ;;  %v1752_v21 = vmul.f32 %v3775_v20, %v3775_v20  ;;  %v1753_v27 = vmul.f32 %v3777_v12, %v3777_v12 }
 0x6db   :  { %v3784_v48 = vsub.f32 %v1727_v42, %v1746_v11  ;;  %v1758_v43 = vsel %vm91_vm0, %v1752_v21, 0.0  ;;  %v1761_v41 = vsel %vm91_vm0, %v1753_v27, 0.0  ;;  %v2410_v21 = vld [vmem:[%s3945_s9] ss:$0 sm:$0xff] }
 0x6dc   :  { %1759 = vadd.xlane.f32.xlu0 %v1758_v43  ;;  %1762 = vadd.xlane.f32.xlu1 %v1761_v41 }
 0x6dd   :  { %v1754_v55 = vmul.f32 %v3784_v48, %v3784_v48 }
 0x6df   :  { %v1764_v46 = vsel %vm91_vm0, %v1754_v55, 0.0 }
 0x6e0   :  { %1765 = vadd.xlane.f32.xlu0 %v1764_v46 }
 0x761   :  { %v1757_v38 = vpop.xlane.xlu1 %1756 }
 0x762   :  { %v1767_v57 = vmul.f32 0.032258064, %v1757_v38 }
 0x764   :  { %2696 = vrsqrt.f32 %v1767_v57  ;;  %vm1773_vm3 = vcmp.eq.f32.partialorder %v1767_v57, inf  ;;  %v1776_v53 = vand.u32 2147483648, %v1767_v57  ;;  %vm1775_vm4 = vcmp.eq.f32.partialorder %v1767_v57, 0.0 }
 0x765   :  { %v1763_v51 = vpop.xlane.xlu1 %1762  ;;  %v1760_v14 = vpop.xlane.xlu0 %1759 }
 0x766   :  { %v1769_v54 = vmul.f32 0.032258064, %v1763_v51  ;;  %v1768_v10 = vmul.f32 0.032258064, %v1760_v14 }
 0x768   :  { %2698 = vrsqrt.f32 %v1769_v54  ;;  %vm1787_vm5 = vcmp.eq.f32.partialorder %v1769_v54, inf  ;;  %vm1789_vm6 = vcmp.eq.f32.partialorder %v1769_v54, 0.0  ;;  %v1790_v47 = vand.u32 2147483648, %v1769_v54 }
 0x769   :  { %2700 = vrsqrt.f32 %v1768_v10  ;;  %v1766_v61 = vpop.xlane.xlu0 %1765  ;;  %vm1780_vm7 = vcmp.eq.f32.partialorder %v1768_v10, inf  ;;  %v1783_v7 = vand.u32 2147483648, %v1768_v10  ;;  %vm1782_vm8 = vcmp.eq.f32.partialorder %v1768_v10, 0.0 }
 0x76a   :  { %v1770_v52 = vmul.f32 0.032258064, %v1766_v61 }
 0x76c   :  { %2702 = vrsqrt.f32 %v1770_v52  ;;  %vm1794_vm9 = vcmp.eq.f32.partialorder %v1770_v52, inf  ;;  %v1797_v0 = vand.u32 2147483648, %v1770_v52  ;;  %vm1796_vm10 = vcmp.eq.f32.partialorder %v1770_v52, 0.0 }
 0x771   :  { %v2697_v33 = vpop.eup %2696 }
 0x772   :  { %v1772_v39 = vmul.f32 %v2697_v33, %v1767_v57  ;;  %v2047_v33 = vld [vmem:[%s3948_s12 + $0x30] sm:$0xff] }
 0x774   :  { %v1774_v3 = vsel %vm1773_vm3, %v1767_v57, %v1772_v39  ;;  %v2048_v39 = vld [vmem:[%s3948_s12 + $0x38] sm:$0xff] }
 0x775   :  { %v2699_v40 = vpop.eup %2698  ;;  %v1777_v26 = vsel %vm1775_vm4, %v1776_v53, %v1774_v3  ;;  %v2054_v53 = vpack.c.bf16 %v2048_v39, %v2047_v33 }
 0x776   :  { %v2701_v35 = vpop.eup %2700  ;;  %v1799_v18 = vadd.f32 1e-06, %v1777_v26  ;;  %v1786_v49 = vmul.f32 %v2699_v40, %v1769_v54  ;;  %v2043_v40 = vld [vmem:[%s3948_s12 + $0x10] sm:$0xff]  ;;  %v2044_v26 = vld [vmem:[%s3948_s12 + $0x18] sm:$0xff] }
 0x777   :  { %v1779_v36 = vmul.f32 %v2701_v35, %v1768_v10  ;;  %2637 = vmatprep.subr.bf16.mxu1 %v2054_v53  ;;  %v2041_v35 = vld [vmem:[%s3948_s12] sm:$0xff] }
 0x778   :  { %2704 = vrcp.f32 %v1799_v18  ;;  %v1788_v37 = vsel %vm1787_vm5, %v1769_v54, %v1786_v49  ;;  %v2052_v18 = vpack.c.bf16 %v2044_v26, %v2043_v40  ;;  %v2042_v49 = vld [vmem:[%s3948_s12 + $0x8] sm:$0xff] }
 0x779   :  { %v2703_v63 = vpop.eup %2702  ;;  %v1791_v4 = vsel %vm1789_vm6, %v1790_v47, %v1788_v37  ;;  %v1781_v58 = vsel %vm1780_vm7, %v1768_v10, %v1779_v36  ;;  %v2071_v47 = vunpack.c.l.bf16 %v2054_v53  ;;  %v2072_v36 = vunpack.c.h.bf16 %v2054_v53 }
 0x77a   :  { %v1801_v50 = vadd.f32 1e-06, %v1791_v4  ;;  %v1784_v59 = vsel %vm1782_vm8, %v1783_v7, %v1781_v58  ;;  %v1793_v42 = vmul.f32 %v2703_v63, %v1770_v52  ;;  %v2051_v37 = vpack.c.bf16 %v2042_v49, %v2041_v35 }
 0x77b   :  { %v1800_v44 = vadd.f32 1e-06, %v1784_v59  ;;  %v2079_v7 = vsub.f32 %v2047_v33, %v2071_v47  ;;  %v2080_v63 = vsub.f32 %v2048_v39, %v2072_v36 }
 0x77c   :  { %2706 = vrcp.f32 %v1801_v50  ;;  %v1795_v22 = vsel %vm1794_vm9, %v1770_v52, %v1793_v42 }
 0x77d   :  { %2708 = vrcp.f32 %v1800_v44  ;;  %v1798_v8 = vsel %vm1796_vm10, %v1797_v0, %v1795_v22  ;;  %v2084_v42 = vpack.c.bf16 %v2080_v63, %v2079_v7  ;;  %v2067_v0 = vunpack.c.l.bf16 %v2052_v18 }
 0x77e   :  { %v1802_v15 = vadd.f32 1e-06, %v1798_v8  ;;  %v2068_v22 = vunpack.c.h.bf16 %v2052_v18 }
 0x77f   :  { %v2075_v8 = vsub.f32 %v2043_v40, %v2067_v0 }
 0x780   :  { %2710 = vrcp.f32 %v1802_v15  ;;  %v2076_v15 = vsub.f32 %v2044_v26, %v2068_v22 }
 0x785   :  { %v2705_v34 = vpop.eup %2704 }
 0x786   :  { %v1804_v28 = vmul.f32 %v2705_v34, %v3771_v45  ;;  %v2082_v34 = vpack.c.bf16 %v2076_v15, %v2075_v8 }
 0x788   :  { %v1817_v1 = vmul.f32 %v2409_v56, %v1804_v28  ;;  %v2066_v28 = vunpack.c.h.bf16 %v2051_v37 }
 0x789   :  { %v2707_v23 = vpop.eup %2706 }
 0x78a   :  { %v2709_v11 = vpop.eup %2708  ;;  %v1808_v27 = vmul.f32 %v2707_v23, %v3777_v12  ;;  %v1827_v19 = vadd.f32 %v2410_v21, %v1817_v1  ;;  %v2729_v12 = vld [vmem:[%s3961_s0 + $0x8] sm:$0xff]  ;;  %v2074_v1 = vsub.f32 %v2042_v49, %v2066_v28 }
 0x78b   :  { %v1806_v43 = vmul.f32 %v2709_v11, %v3775_v20 }
 0x78c   :  { %v1819_v41 = vmul.f32 %v2409_v56, %v1808_v27  ;;  %v3821_v24 = vadd.f32 %v2728_v32, %v1827_v19  ;;  %v2417_v32 = vld [vmem:[%s3947_s11] ss:$0 sm:$0xff] }
 0x78d   :  { %v2711_v55 = vpop.eup %2710  ;;  %v1818_v46 = vmul.f32 %v2409_v56, %v1806_v43 }
 0x78e   :  { %v1810_v62 = vmul.f32 %v2711_v55, %v3784_v48  ;;  %v1829_v45 = vadd.f32 %v2410_v21, %v1819_v41  ;;  %v2730_v48 = vld [vmem:[%s3961_s0 + $0x10] sm:$0xff] }
 0x78f   :  { %v1828_v25 = vadd.f32 %v2410_v21, %v1818_v46 }
 0x790   :  { %v1820_v17 = vmul.f32 %v2409_v56, %v1810_v62  ;;  %v3833_v6 = vadd.f32 %v2730_v48, %v1829_v45  ;;  %v2065_v56 = vunpack.c.l.bf16 %v2051_v37 }
 0x791   :  { %v3826_v20 = vadd.f32 %v2729_v12, %v1828_v25 }
 0x792   :  { %v1830_v9 = vadd.f32 %v2410_v21, %v1820_v17  ;;  %v2073_v23 = vsub.f32 %v2041_v35, %v2065_v56 }
 0x793   :  { %v1839_v5 = vpack.c.bf16 %v3826_v20, %v3821_v24 }
 0x794   :  { %v3838_v13 = vadd.f32 %v2731_v16, %v1830_v9  ;;  %v2081_v11 = vpack.c.bf16 %v2074_v1, %v2073_v23 }
 0x795   :  { %2625 = vmatprep.mubr.msk.bf16.mxu1 %vm91_vm0, %v1839_v5  ;;  %v1843_v60 = vunpack.c.l.bf16 %v1839_v5  ;;  %v1844_v30 = vunpack.c.h.bf16 %v1839_v5 }
 0x796   :  { %v1840_v31 = vpack.c.bf16 %v3838_v13, %v3833_v6 }
 0x797   :  { %v1847_v38 = vsub.f32 %v3821_v24, %v1843_v60  ;;  %v1848_v57 = vsub.f32 %v3826_v20, %v1844_v30 }
 0x798   :  { %2626 = vmatmul.mubr.msk.bf16.vlgmr.msra.gmra.mxu1 %vm91_vm0, %v1840_v31  ;;  %v1845_v51 = vunpack.c.l.bf16 %v1840_v31  ;;  %v1846_v14 = vunpack.c.h.bf16 %v1840_v31 }
 0x799   :  { %v1851_v54 = vpack.c.bf16 %v1848_v57, %v1847_v38  ;;  %2638 = vmatpush3.bf16.msra.mxu1 %v2054_v53 }
 0x79a   :  { %v1849_v10 = vsub.f32 %v3833_v6, %v1845_v51  ;;  %v1850_v61 = vsub.f32 %v3838_v13, %v1846_v14 }
 0x79b   :  { %2617 = vmatprep.mubr.msk.bf16.mxu0 %vm91_vm0, %v1851_v54 }
 0x79c   :  { %v1852_v52 = vpack.c.bf16 %v1850_v61, %v1849_v10 }
 0x79e   :  { %2618 = vmatmul.mubr.msk.bf16.vlgmr.msra.gmra.mxu0 %vm91_vm0, %v1852_v52 }
 0x79f   :  { %2630 = vmatpush3.bf16.msra.mxu0 %v3803_v2  ;;  %2633 = vmatprep.mubr.msk.bf16.mxu0 %vm91_vm0, %v1839_v5  ;;  %v2045_v2 = vld [vmem:[%s3948_s12 + $0x20] sm:$0xff] }
 0x7a0   :  { %2631 = vmatprep.subr.bf16.mxu0 %v3805_v29 }
 0x7a3   :  { %2632 = vmatpush3.bf16.msra.mxu0 %v3805_v29  ;;  %v2046_v29 = vld [vmem:[%s3948_s12 + $0x28] sm:$0xff] }
 0x7a4   :  { %2649 = vmatprep.subr.bf16.mxu0 %v2054_v53  ;;  %v2053_v3 = vpack.c.bf16 %v2046_v29, %v2045_v2 }
 0x7a6   :  { %2634 = vmatmul.mubr.msk.bf16.vlgmr.msra.gmra.mxu0 %vm91_vm0, %v1840_v31  ;;  %2639 = vmatprep.subr.bf16.mxu1 %v2053_v3  ;;  %v2069_v4 = vunpack.c.l.bf16 %v2053_v3  ;;  %v2070_v58 = vunpack.c.h.bf16 %v2053_v3 }
 0x7a7   :  { %2650 = vmatpush3.bf16.msra.mxu0 %v2054_v53  ;;  %2640 = vmatpush3.bf16.msra.mxu1 %v2053_v3 }
 0x7a8   :  { %2651 = vmatprep.subr.bf16.mxu0 %v2053_v3  ;;  %2641 = vmatprep.subr.bf16.mxu1 %v2052_v18  ;;  %v2077_v50 = vsub.f32 %v2045_v2, %v2069_v4  ;;  %v2078_v59 = vsub.f32 %v2046_v29, %v2070_v58 }
 0x7aa   :  { %v2083_v44 = vpack.c.bf16 %v2078_v59, %v2077_v50 }
 0x7ab   :  { %2652 = vmatpush3.bf16.msra.mxu0 %v2053_v3  ;;  %2642 = vmatpush3.bf16.msra.mxu1 %v2052_v18 }
 0x7ac   :  { %2653 = vmatprep.subr.bf16.mxu0 %v2052_v18  ;;  %2643 = vmatprep.subr.bf16.mxu1 %v2051_v37 }
 0x7af   :  { %2654 = vmatpush3.bf16.msra.mxu0 %v2052_v18  ;;  %2644 = vmatpush3.bf16.msra.mxu1 %v2051_v37 }
 0x7b0   :  { %2655 = vmatprep.subr.bf16.mxu0 %v2051_v37  ;;  %2661 = vmatprep.subr.bf16.mxu1 %v2084_v42 }
 0x7b3   :  { %2656 = vmatpush3.bf16.msra.mxu0 %v2051_v37 }
 0x858   :  { %v2627_v21 = vpop.f32.mrf.mxu1 }
 0x85a   :  { %v1958_v41 = vpop.f32.mrf.mxu1 }
 0x85c   :  { %v2628_v62 = vpop.f32.mrf.mxu1 }
 0x85e   :  { %v2619_v27 = vpop.f32.mrf.mxu0  ;;  %v1961_v48 = vpop.f32.mrf.mxu1 }
 0x85f   :  { %v1967_v19 = vadd.f32 %v2627_v21, %v2619_v27 }
 0x860   :  { %v1903_v43 = vpop.f32.mrf.mxu0 }
 0x861   :  { %v1959_v17 = vadd.f32 %v1958_v41, %v1903_v43 }
 0x862   :  { %v2620_v55 = vpop.f32.mrf.mxu0 }
 0x863   :  { %v1970_v9 = vadd.f32 %v2628_v62, %v2620_v55 }
 0x864   :  { %v1906_v46 = vpop.f32.mrf.mxu0 }
 0x865   :  { %v1962_v60 = vadd.f32 %v1961_v48, %v1906_v46 }
 0x866   :  { %v2635_v25 = vpop.f32.mrf.mxu0 }
 0x867   :  { %v2024_v45 = vadd.f32 %v2635_v25, %v1967_v19 }
 0x868   :  { %v2007_v12 = vpop.f32.mrf.mxu0 }
 0x869   :  { %v2022_v5 = vadd.f32 %v2007_v12, %v1959_v17  ;;  %v2035_v30 = vadd.f32 %v2417_v32, %v2024_v45 }
 0x86a   :  { %v2636_v16 = vpop.f32.mrf.mxu0 }
 0x86b   :  { %v2025_v31 = vadd.f32 %v2636_v16, %v1970_v9  ;;  %v2033_v57 = vadd.f32 %v2417_v32, %v2022_v5  ;;  %v2039_v54 = vmax.f32 %v2035_v30, 0.0 }
 0x86c   :  { %v2010_v38 = vpop.f32.mrf.mxu0 }
 0x86d   :  { %v2036_v51 = vadd.f32 %v2417_v32, %v2025_v31  ;;  %v2023_v14 = vadd.f32 %v2010_v38, %v1962_v60  ;;  %v2037_v52 = vmax.f32 %v2033_v57, 0.0 }
 0x86f   :  { %v2040_v10 = vmax.f32 %v2036_v51, 0.0  ;;  %v2034_v61 = vadd.f32 %v2417_v32, %v2023_v14 }
 0x871   :  { %v2050_v33 = vpack.c.bf16 %v2040_v10, %v2039_v54  ;;  %v2038_v39 = vmax.f32 %v2034_v61, 0.0 }
 0x873   :  { %v2057_v53 = vunpack.c.l.bf16 %v2050_v33  ;;  %v2058_v2 = vunpack.c.h.bf16 %v2050_v33  ;;  %v2049_v29 = vpack.c.bf16 %v2038_v39, %v2037_v52 }
 0x875   :  { %v2055_v3 = vunpack.c.l.bf16 %v2049_v29  ;;  %v2056_v40 = vunpack.c.h.bf16 %v2049_v29  ;;  %2657 = vmatprep.mubr.msk.bf16.mxu0 %vm654_vm1, %v2049_v29  ;;  %v2061_v26 = vsub.f32 %v2039_v54, %v2057_v53  ;;  %v2062_v35 = vsub.f32 %v2040_v10, %v2058_v2 }
 0x876   :  { %2658 = vmatmul.mubr.msk.bf16.vlgmr.msra.gmra.mxu0 %vm654_vm1, %v2050_v33 }
 0x877   :  { %v2059_v18 = vsub.f32 %v2037_v52, %v2055_v3  ;;  %v2060_v49 = vsub.f32 %v2038_v39, %v2056_v40  ;;  %v2064_v36 = vpack.c.bf16 %v2062_v35, %v2061_v26 }
 0x879   :  { %v2063_v47 = vpack.c.bf16 %v2060_v49, %v2059_v18 }
 0x87b   :  { %2645 = vmatprep.mubr.msk.bf16.mxu1 %vm654_vm1, %v2063_v47 }
 0x87c   :  { %2646 = vmatmul.mubr.msk.bf16.vlgmr.msra.gmra.mxu1 %vm654_vm1, %v2064_v36 }
 0x87d   :  { %2662 = vmatpush3.bf16.msra.mxu1 %v2084_v42  ;;  %2669 = vmatprep.mubr.msk.bf16.mxu1 %vm654_vm1, %v2049_v29 }
 0x87e   :  { %2663 = vmatprep.subr.bf16.mxu1 %v2083_v44 }
 0x881   :  { %2664 = vmatpush3.bf16.msra.mxu1 %v2083_v44 }
 0x882   :  { %2665 = vmatprep.subr.bf16.mxu1 %v2082_v34 }
 0x885   :  { %2666 = vmatpush3.bf16.msra.mxu1 %v2082_v34  ;;  %v2424_v34 = vld [vmem:[%s3949_s13] ss:$0 sm:$0xff] }
 0x886   :  { %2667 = vmatprep.subr.bf16.mxu1 %v2081_v11 }
 0x889   :  { %2668 = vmatpush3.bf16.msra.mxu1 %v2081_v11 }
 0x88c   :  { %2670 = vmatmul.mubr.msk.bf16.vlgmr.msra.gmra.mxu1 %vm654_vm1, %v2050_v33 }
 0x936   :  { %v2659_v63 = vpop.f32.mrf.mxu0 }
 0x938   :  { %v2180_v58 = vpop.f32.mrf.mxu0 }
 0x93a   :  { %v2660_v59 = vpop.f32.mrf.mxu0 }
 0x93c   :  { %v2647_v37 = vpop.f32.mrf.mxu1  ;;  %v2183_v44 = vpop.f32.mrf.mxu0 }
 0x93d   :  { %v2189_v22 = vadd.f32 %v2659_v63, %v2647_v37 }
 0x93e   :  { %v2125_v7 = vpop.f32.mrf.mxu1 }
 0x93f   :  { %v2181_v42 = vadd.f32 %v2180_v58, %v2125_v7 }
 0x940   :  { %v2648_v4 = vpop.f32.mrf.mxu1 }
 0x941   :  { %v2192_v23 = vadd.f32 %v2660_v59, %v2648_v4 }
 0x942   :  { %v2128_v50 = vpop.f32.mrf.mxu1 }
 0x943   :  { %v2184_v1 = vadd.f32 %v2183_v44, %v2128_v50 }
 0x94c   :  { %v2671_v0 = vpop.f32.mrf.mxu1 }
 0x94d   :  { %v2246_v15 = vadd.f32 %v2671_v0, %v2189_v22 }
 0x94e   :  { %v2229_v8 = vpop.f32.mrf.mxu1 }
 0x94f   :  { %v2244_v56 = vadd.f32 %v2229_v8, %v2181_v42  ;;  %v2257_v27 = vadd.f32 %v2424_v34, %v2246_v15 }
 0x950   :  { %v2672_v28 = vpop.f32.mrf.mxu1 }
 0x951   :  { %v2255_v11 = vadd.f32 %v2424_v34, %v2244_v56  ;;  %v2247_v43 = vadd.f32 %v2672_v28, %v2192_v23  ;;  %v2267_v62 = vsel %vm91_vm0, %v2257_v27, 0.0 }
 0x952   :  { %v2232_v21 = vpop.f32.mrf.mxu1 }
 0x953   :  { %v2245_v41 = vadd.f32 %v2232_v21, %v2184_v1  ;;  %v2261_v55 = vsel %vm91_vm0, %v2255_v11, 0.0  ;;  %v2258_v19 = vadd.f32 %v2424_v34, %v2247_v43 }
 0x954   :  { %2262 = vadd.xlane.f32.xlu1 %v2261_v55 }
 0x955   :  { %v2256_v46 = vadd.f32 %v2424_v34, %v2245_v41  ;;  %v2270_v17 = vsel %vm91_vm0, %v2258_v19, 0.0  ;;  %v2425_v41 = vld [vmem:[%s3950_s14] ss:$0 sm:$0xff]  ;;  %s2758_s14 = smov [#allocation2]  }
 0x957   :  { %v2264_v25 = vsel %vm91_vm0, %v2256_v46, 0.0 }
 0x958   :  { %2268 = vadd.xlane.f32.xlu1 %v2267_v62  ;;  %2265 = vadd.xlane.f32.xlu0 %v2264_v25 }
 0x95c   :  { %2271 = vadd.xlane.f32.xlu0 %v2270_v17 }
 0x9dd   :  { %v2263_v45 = vpop.xlane.xlu1 %2262 }
 0x9de   :  { %v2273_v32 = vmul.f32 0.03125, %v2263_v45 }
 0x9e0   :  { %v3895_v12 = vsub.f32 %v2255_v11, %v2273_v32 }
 0x9e1   :  { %v2269_v9 = vpop.xlane.xlu1 %2268  ;;  %v2266_v5 = vpop.xlane.xlu0 %2265 }
 0x9e2   :  { %v2275_v48 = vmul.f32 0.03125, %v2269_v9  ;;  %v2274_v16 = vmul.f32 0.03125, %v2266_v5  ;;  %v2281_v60 = vmul.f32 %v3895_v12, %v3895_v12 }
 0x9e4   :  { %v3899_v30 = vsub.f32 %v2257_v27, %v2275_v48  ;;  %v3901_v31 = vsub.f32 %v2256_v46, %v2274_v16  ;;  %v2285_v38 = vsel %vm91_vm0, %v2281_v60, 0.0  ;;  %v2426_v46 = vld [vmem:[%s3951_s15] ss:$0 sm:$0xff]  ;;  %s2374_s15 = sshll.u32 %s2758_s14, 4  ;;  %s2375_s15 = int_to_ptr.vmem [resolvable:$true] %s2374_s15 }
 0x9e5   :  { %2286 = vadd.xlane.f32.xlu1 %v2285_v38  ;;  %v2272_v57 = vpop.xlane.xlu0 %2271  ;;  %s2732_s2 = scalar_lea.vmem %s2375_s15, 512  ;;  %p2737_p1 = scmp.lt.s32.totalorder %s2375_s15, %s2375_s15 }
 0x9e6   :  { %v2276_v51 = vmul.f32 0.03125, %v2272_v57  ;;  %v2283_v14 = vmul.f32 %v3899_v30, %v3899_v30  ;;  %v2282_v54 = vmul.f32 %v3901_v31, %v3901_v31  ;;  %p2733_p0 = scmp.ne.s32.totalorder %s2375_s15, %s2732_s2  ;;  %p2738_p2 = scmp.lt.s32.totalorder %s2732_s2, %s2732_s2 }
 0x9e8   :  { %v3908_v10 = vsub.f32 %v2258_v19, %v2276_v51  ;;  %v2291_v61 = vsel %vm91_vm0, %v2283_v14, 0.0  ;;  %v2288_v52 = vsel %vm91_vm0, %v2282_v54, 0.0  ;;  %p2739_p3 = por %p2738_p2, %p2737_p1 }
 0x9e9   :  { %2292 = vadd.xlane.f32.xlu1 %v2291_v61  ;;  %2289 = vadd.xlane.f32.xlu0 %v2288_v52 }
 0x9ea   :  { %v2284_v33 = vmul.f32 %v3908_v10, %v3908_v10  ;;  %p2740_p4 = pnand %p2739_p3, %p2733_p0 }
 0x9ec   :  { %v2294_v39 = vsel %vm91_vm0, %v2284_v33, 0.0 }
 0x9ed   :  { %2295 = vadd.xlane.f32.xlu0 %v2294_v39 }
 0xa6e   :  { %v2287_v53 = vpop.xlane.xlu1 %2286 }
 0xa6f   :  { %v2297_v2 = vmul.f32 0.032258064, %v2287_v53 }
 0xa71   :  { %2712 = vrsqrt.f32 %v2297_v2  ;;  %vm2303_vm11 = vcmp.eq.f32.partialorder %v2297_v2, inf  ;;  %v2306_v36 = vand.u32 2147483648, %v2297_v2  ;;  %vm2305_vm12 = vcmp.eq.f32.partialorder %v2297_v2, 0.0 }
 0xa72   :  { %v2293_v29 = vpop.xlane.xlu1 %2292  ;;  %v2290_v3 = vpop.xlane.xlu0 %2289 }
 0xa73   :  { %v2299_v40 = vmul.f32 0.032258064, %v2293_v29  ;;  %v2298_v26 = vmul.f32 0.032258064, %v2290_v3 }
 0xa75   :  { %2714 = vrsqrt.f32 %v2299_v40  ;;  %vm2317_vm13 = vcmp.eq.f32.partialorder %v2299_v40, inf  ;;  %vm2319_vm14 = vcmp.eq.f32.partialorder %v2299_v40, 0.0  ;;  %v2320_v59 = vand.u32 2147483648, %v2299_v40 }
 0xa76   :  { %2716 = vrsqrt.f32 %v2298_v26  ;;  %v2296_v35 = vpop.xlane.xlu0 %2295  ;;  %vm2310_vm15 = vcmp.eq.f32.partialorder %v2298_v26, inf  ;;  %v2313_v42 = vand.u32 2147483648, %v2298_v26  ;;  %vm2312_vm1 = vcmp.eq.f32.partialorder %v2298_v26, 0.0 }
 0xa77   :  { %v2300_v18 = vmul.f32 0.032258064, %v2296_v35 }
 0xa79   :  { %2718 = vrsqrt.f32 %v2300_v18  ;;  %vm2324_vm2 = vcmp.eq.f32.partialorder %v2300_v18, inf  ;;  %v2327_v1 = vand.u32 2147483648, %v2300_v18  ;;  %vm2326_vm3 = vcmp.eq.f32.partialorder %v2300_v18, 0.0 }
 0xa7e   :  { %v2713_v49 = vpop.eup %2712 }
 0xa7f   :  { %v2302_v47 = vmul.f32 %v2713_v49, %v2297_v2 }
 0xa81   :  { %v2304_v37 = vsel %vm2303_vm11, %v2297_v2, %v2302_v47 }
 0xa82   :  { %v2715_v7 = vpop.eup %2714  ;;  %v2307_v63 = vsel %vm2305_vm12, %v2306_v36, %v2304_v37 }
 0xa83   :  { %v2717_v4 = vpop.eup %2716  ;;  %v2329_v58 = vadd.f32 1e-06, %v2307_v63  ;;  %v2316_v50 = vmul.f32 %v2715_v7, %v2299_v40 }
 0xa84   :  { %v2309_v0 = vmul.f32 %v2717_v4, %v2298_v26 }
 0xa85   :  { %2720 = vrcp.f32 %v2329_v58  ;;  %v2318_v22 = vsel %vm2317_vm13, %v2299_v40, %v2316_v50 }
 0xa86   :  { %v2719_v8 = vpop.eup %2718  ;;  %v2321_v15 = vsel %vm2319_vm14, %v2320_v59, %v2318_v22  ;;  %v2311_v56 = vsel %vm2310_vm15, %v2298_v26, %v2309_v0 }
 0xa87   :  { %v2331_v44 = vadd.f32 1e-06, %v2321_v15  ;;  %v2314_v34 = vsel %vm2312_vm1, %v2313_v42, %v2311_v56  ;;  %v2323_v28 = vmul.f32 %v2719_v8, %v2300_v18 }
 0xa88   :  { %v2330_v23 = vadd.f32 1e-06, %v2314_v34 }
 0xa89   :  { %2722 = vrcp.f32 %v2331_v44  ;;  %v2325_v11 = vsel %vm2324_vm2, %v2300_v18, %v2323_v28 }
 0xa8a   :  { %2724 = vrcp.f32 %v2330_v23  ;;  %v2328_v21 = vsel %vm2326_vm3, %v2327_v1, %v2325_v11 }
 0xa8b   :  { %v2332_v27 = vadd.f32 1e-06, %v2328_v21 }
 0xa8d   :  { %2726 = vrcp.f32 %v2332_v27 }
 0xa92   :  { %v2721_v43 = vpop.eup %2720 }
 0xa93   :  { %v2334_v55 = vmul.f32 %v2721_v43, %v3895_v12 }
 0xa95   :  { %v2347_v19 = vmul.f32 %v2425_v41, %v2334_v55 }
 0xa96   :  { %v2723_v62 = vpop.eup %2722 }
 0xa97   :  { %v2725_v25 = vpop.eup %2724  ;;  %v2338_v17 = vmul.f32 %v2723_v62, %v3899_v30  ;;  %v2357_v45 = vadd.f32 %v2426_v46, %v2347_v19 }
 0xa98   :  { %v2336_v32 = vmul.f32 %v2725_v25, %v3901_v31 }
 0xa99   :  { %v2349_v9 = vmul.f32 %v2425_v41, %v2338_v17  ;;  %v2361_v5 = vadd.f32 %v2357_v45, %v3821_v24 }
 0xa9a   :  { %v2727_v48 = vpop.eup %2726  ;;  %v2348_v16 = vmul.f32 %v2425_v41, %v2336_v32 }
 0xa9b   :  { %v2340_v60 = vmul.f32 %v2727_v48, %v3908_v10  ;;  %v2359_v12 = vadd.f32 %v2426_v46, %v2349_v9  ;;  %2365 = vst.msk [vmem:[#allocation2] sm:$0xff] %vm91_vm0, %v2361_v5 }
 0xa9c   :  { %v2358_v38 = vadd.f32 %v2426_v46, %v2348_v16 }
 0xa9d   :  { %v2350_v57 = vmul.f32 %v2425_v41, %v2340_v60  ;;  %v2363_v51 = vadd.f32 %v2359_v12, %v3833_v6 }
 0xa9e   :  { %v2362_v14 = vadd.f32 %v2358_v38, %v3826_v20 }
 0xa9f   :  { %v2360_v30 = vadd.f32 %v2426_v46, %v2350_v57  ;;  %2367 = vst.msk [vmem:[#allocation2 + $0x10] sm:$0xff] %vm91_vm0, %v2363_v51 }
 0xaa0   :  { %2366 = vst.msk [vmem:[#allocation2 + $0x8] sm:$0xff] %vm91_vm0, %v2362_v14 }
 0xaa1   :  { %v2364_v24 = vadd.f32 %v2360_v30, %v3838_v13 }
 0xaa3   :  { %2368 = vst.msk [vmem:[#allocation2 + $0x18] sm:$0xff] %vm91_vm0, %v2364_v24 }
 0xaa4   :  { %2743 = shalt.err (!%p2740_p4)
}
 0xaa5   :  { %s2759_s29 = smov 128   ;;  %s2760_s30 = smov 8  }
 0xaa6   :  { %2380 = dma.vmem_to_hbm [thread:$0]  %s2375_s15, 512, %s3952_s16, [#allocation3], %s2759_s29, %s2759_s29, %s2760_s30  }
 0xaa7   :  { %2752 = dma.done.wait [#allocation3], 512  }
 0xaa8   :  { %2753 = vsyncadd [#allocation3], 4294966784 }
 0xaa9   :  { %2384 = vsyncpa [#allocation3], 1 }

</bundles_post_ra>
